<compile_context>
chip_gen: v7x
topology: tpu7x:2x2x1
jax: 0.10.0
libtpu: 0.0.40
codegen_flags: <defaults>
</compile_context>

<pallas_src>
import jax
import jax.numpy as jnp
from jax.experimental import pallas as pl
from jax.experimental.pallas import tpu as pltpu


def _permute_gates(w, H):
    """Reorder gate blocks along the last axis: [i, f, g, o] -> [i, f, o, g]."""
    i = w[..., 0 * H:1 * H]
    f = w[..., 1 * H:2 * H]
    g = w[..., 2 * H:3 * H]
    o = w[..., 3 * H:4 * H]
    return jnp.concatenate([i, f, o, g], axis=-1)


def lstm_recurrence_kernel(gx_ref, whh_ref, h_out_ref):
    """gx_ref:   (T, B, 4H) f32  precomputed x@W_ih + bias, gate order [i,f,o,g]
       whh_ref:  (H, 4H)    bf16 recurrent weights, same gate order
       h_out_ref:(B, H)     f32  last hidden state."""
    T, B, _ = gx_ref.shape
    H = whh_ref.shape[0]

    whh = whh_ref[...]            # load once; stays resident across all steps
    h0 = jnp.zeros((B, H), jnp.float32)
    c0 = jnp.zeros((B, H), jnp.float32)

    def step(t, carry):
        h, c = carry
        gates = gx_ref[t] + jnp.dot(h.astype(whh.dtype), whh,
                                    preferred_element_type=jnp.float32)
        sig = jax.nn.sigmoid(gates[:, :3 * H])   # [i | f | o] one contiguous EUP slab
        g = jnp.tanh(gates[:, 3 * H:])           # [g]
        i_g = sig[:, 0 * H:1 * H]
        f_g = sig[:, 1 * H:2 * H]
        o_g = sig[:, 2 * H:3 * H]
        c_new = f_g * c + i_g * g
        h_new = o_g * jnp.tanh(c_new)
        return (h_new, c_new)

    h_final, _ = jax.lax.fori_loop(0, T, step, (h0, c0), unroll=True)
    h_out_ref[...] = h_final


def lstm_classifier_forward(tokens, emb_w, w_ih, w_hh, b_ih, b_hh, w_fc, b_fc):
    """tokens: (B, T) int32. Returns logits (B, O) float32.
    Weight layout: w_ih (E, 4H), w_hh (H, 4H), gate order [i, f, g, o]
    (torch.nn.LSTM convention, transposed)."""
    B, T = tokens.shape
    H = w_hh.shape[0]
    O = w_fc.shape[1]

    # --- parallel pre-work (plain XLA, off the serial critical path) ---------
    x = jnp.take(emb_w, tokens, axis=0)                      # (B, T, E) embedding

    w_ih_p = _permute_gates(w_ih, H)                         # (E, 4H) [i,f,o,g]
    w_hh_p = _permute_gates(w_hh, H).astype(jnp.bfloat16)    # (H, 4H) bf16
    b_p = _permute_gates(b_ih + b_hh, H)                     # (4H,)

    # Batched input projection for all timesteps, emitted time-major directly.
    gates_x = jnp.einsum("bte,eg->tbg", x, w_ih_p) + b_p     # (T, B, 4H) f32

    # --- serial recurrence in a single Pallas invocation ---------------------
    h_last = pl.pallas_call(
        lstm_recurrence_kernel,
        out_shape=jax.ShapeDtypeStruct((B, H), jnp.float32),
        in_specs=[
            pl.BlockSpec(memory_space=pltpu.MemorySpace.VMEM),  # gates_x
            pl.BlockSpec(memory_space=pltpu.MemorySpace.VMEM),  # W_hh (bf16)
        ],
        out_specs=pl.BlockSpec(memory_space=pltpu.MemorySpace.VMEM),
    )(gates_x, w_hh_p)

    # --- final classifier (O=2 is lane-sparse -> keep it outside the kernel) --
    return h_last @ w_fc + b_fc.reshape(1, O)


def lstm_classifier_reference(tokens, emb_w, w_ih, w_hh, b_ih, b_hh, w_fc, b_fc):
    """Pure-JAX f32 reference matching torch.nn.LSTM semantics (gate order i,f,g,o)."""
    B, T = tokens.shape
    H = w_hh.shape[0]
    x = jnp.take(emb_w, tokens, axis=0)          # (B, T, E)

    def step(carry, x_t):
        h, c = carry
        gates = x_t @ w_ih + h @ w_hh + b_ih + b_hh
        i = jax.nn.sigmoid(gates[:, 0 * H:1 * H])
        f = jax.nn.sigmoid(gates[:, 1 * H:2 * H])
        g = jnp.tanh(gates[:, 2 * H:3 * H])
        o = jax.nn.sigmoid(gates[:, 3 * H:4 * H])
        c = f * c + i * g
        h = o * jnp.tanh(c)
        return (h, c), None

    h0 = jnp.zeros((B, H), jnp.float32)
    c0 = jnp.zeros((B, H), jnp.float32)
    (h_n, _), _ = jax.lax.scan(step, (h0, c0), jnp.transpose(x, (1, 0, 2)))
    return h_n @ w_fc + b_fc


if __name__ == "__main__":
    # Small, deterministic shapes consistent with the module's forward
    # (batch_first tokens -> embedding -> LSTM -> FC on last hidden).
    B, T, E, H, O, V = 8, 16, 128, 128, 2, 64

    key = jax.random.PRNGKey(0)
    ks = jax.random.split(key, 8)

    tokens = jax.random.randint(ks[0], (B, T), 0, V, dtype=jnp.int32)
    emb_w = jax.random.normal(ks[1], (V, E), jnp.float32) * 0.1
    w_ih = jax.random.normal(ks[2], (E, 4 * H), jnp.float32) * 0.05
    w_hh = jax.random.normal(ks[3], (H, 4 * H), jnp.float32) * 0.05
    b_ih = jax.random.normal(ks[4], (4 * H,), jnp.float32) * 0.05
    b_hh = jax.random.normal(ks[5], (4 * H,), jnp.float32) * 0.05
    w_fc = jax.random.normal(ks[6], (H, O), jnp.float32) * 0.1
    b_fc = jax.random.normal(ks[7], (O,), jnp.float32) * 0.1

    out = lstm_classifier_forward(tokens, emb_w, w_ih, w_hh, b_ih, b_hh, w_fc, b_fc)
    out = jax.block_until_ready(out)

    ref = lstm_classifier_reference(tokens, emb_w, w_ih, w_hh, b_ih, b_hh, w_fc, b_fc)
    assert out.shape == (B, O)
    # bf16 recurrent weights -> compare against the f32 reference with a
    # correspondingly looser tolerance (rounding accumulates over T steps).
    assert jnp.allclose(out, ref, atol=1e-2, rtol=1e-2), "mismatch vs reference"

    print("KERNEL_OK")
</pallas_src>

<mosaic_0001>
module attributes {stable_mosaic.version = 11 : i64} {
  func.func @lstm_recurrence_kernel(%arg0: memref<16x8x512xf32, #tpu.memory_space<vmem>>, %arg1: memref<128x512xbf16, #tpu.memory_space<vmem>>, %arg2: memref<8x128xf32, #tpu.memory_space<vmem>>) attributes {dimension_semantics = [], scalar_prefetch = 0 : i64, scratch_operands = 0 : i64, tpu.core_type = #tpu.core_type<tc>} {
    %c0 = arith.constant 0 : index
    %c0_0 = arith.constant 0 : index
    %0 = vector.load %arg1[%c0, %c0_0] : memref<128x512xbf16, #tpu.memory_space<vmem>>, vector<128x512xbf16>
    %cst = arith.constant 0.000000e+00 : f32
    %1 = vector.broadcast %cst : f32 to vector<8x128xf32>
    %cst_1 = arith.constant 0.000000e+00 : f32
    %2 = vector.broadcast %cst_1 : f32 to vector<8x128xf32>
    %c0_i32 = arith.constant 0 : i32
    %3 = arith.index_cast %c0_i32 : i32 to index
    %c0_2 = arith.constant 0 : index
    %c0_3 = arith.constant 0 : index
    %4 = vector.load %arg0[%3, %c0_2, %c0_3] : memref<16x8x512xf32, #tpu.memory_space<vmem>>, vector<1x8x512xf32>
    %5 = vector.shape_cast %4 : vector<1x8x512xf32> to vector<8x512xf32>
    %6 = arith.truncf %1 : vector<8x128xf32> to vector<8x128xbf16>
    %cst_4 = arith.constant dense<0.000000e+00> : vector<8x512xf32>
    %7 = tpu.matmul %6, %0, %cst_4 {dimension_numbers = #tpu.dot_dimension_numbers<[1], [0], [0], [1], [0, 0, 1, 1], [], []>} : vector<8x128xbf16>, vector<128x512xbf16>, vector<8x512xf32> -> vector<8x512xf32>
    %8 = arith.addf %5, %7 : vector<8x512xf32>
    %9 = vector.extract_strided_slice %8 {offsets = [0, 0], sizes = [8, 384], strides = [1, 1]} : vector<8x512xf32> to vector<8x384xf32>
    %10 = arith.negf %9 : vector<8x384xf32>
    %11 = math.exp %10 : vector<8x384xf32>
    %cst_5 = arith.constant 1.000000e+00 : f32
    %12 = vector.broadcast %cst_5 : f32 to vector<8x384xf32>
    %13 = arith.addf %12, %11 : vector<8x384xf32>
    %14 = arith.divf %12, %13 : vector<8x384xf32>
    %15 = vector.extract_strided_slice %8 {offsets = [0, 384], sizes = [8, 128], strides = [1, 1]} : vector<8x512xf32> to vector<8x128xf32>
    %16 = math.tanh %15 : vector<8x128xf32>
    %17 = vector.extract_strided_slice %14 {offsets = [0, 0], sizes = [8, 128], strides = [1, 1]} : vector<8x384xf32> to vector<8x128xf32>
    %18 = vector.extract_strided_slice %14 {offsets = [0, 128], sizes = [8, 128], strides = [1, 1]} : vector<8x384xf32> to vector<8x128xf32>
    %19 = vector.extract_strided_slice %14 {offsets = [0, 256], sizes = [8, 128], strides = [1, 1]} : vector<8x384xf32> to vector<8x128xf32>
    %20 = arith.mulf %18, %2 : vector<8x128xf32>
    %21 = arith.mulf %17, %16 : vector<8x128xf32>
    %22 = arith.addf %20, %21 : vector<8x128xf32>
    %23 = math.tanh %22 : vector<8x128xf32>
    %24 = arith.mulf %19, %23 : vector<8x128xf32>
    %c1_i32 = arith.constant 1 : i32
    %25 = arith.index_cast %c1_i32 : i32 to index
    %c0_6 = arith.constant 0 : index
    %c0_7 = arith.constant 0 : index
    %26 = vector.load %arg0[%25, %c0_6, %c0_7] : memref<16x8x512xf32, #tpu.memory_space<vmem>>, vector<1x8x512xf32>
    %27 = vector.shape_cast %26 : vector<1x8x512xf32> to vector<8x512xf32>
    %28 = arith.truncf %24 : vector<8x128xf32> to vector<8x128xbf16>
    %cst_8 = arith.constant dense<0.000000e+00> : vector<8x512xf32>
    %29 = tpu.matmul %28, %0, %cst_8 {dimension_numbers = #tpu.dot_dimension_numbers<[1], [0], [0], [1], [0, 0, 1, 1], [], []>} : vector<8x128xbf16>, vector<128x512xbf16>, vector<8x512xf32> -> vector<8x512xf32>
    %30 = arith.addf %27, %29 : vector<8x512xf32>
    %31 = vector.extract_strided_slice %30 {offsets = [0, 0], sizes = [8, 384], strides = [1, 1]} : vector<8x512xf32> to vector<8x384xf32>
    %32 = arith.negf %31 : vector<8x384xf32>
    %33 = math.exp %32 : vector<8x384xf32>
    %cst_9 = arith.constant 1.000000e+00 : f32
    %34 = vector.broadcast %cst_9 : f32 to vector<8x384xf32>
    %35 = arith.addf %34, %33 : vector<8x384xf32>
    %36 = arith.divf %34, %35 : vector<8x384xf32>
    %37 = vector.extract_strided_slice %30 {offsets = [0, 384], sizes = [8, 128], strides = [1, 1]} : vector<8x512xf32> to vector<8x128xf32>
    %38 = math.tanh %37 : vector<8x128xf32>
    %39 = vector.extract_strided_slice %36 {offsets = [0, 0], sizes = [8, 128], strides = [1, 1]} : vector<8x384xf32> to vector<8x128xf32>
    %40 = vector.extract_strided_slice %36 {offsets = [0, 128], sizes = [8, 128], strides = [1, 1]} : vector<8x384xf32> to vector<8x128xf32>
    %41 = vector.extract_strided_slice %36 {offsets = [0, 256], sizes = [8, 128], strides = [1, 1]} : vector<8x384xf32> to vector<8x128xf32>
    %42 = arith.mulf %40, %22 : vector<8x128xf32>
    %43 = arith.mulf %39, %38 : vector<8x128xf32>
    %44 = arith.addf %42, %43 : vector<8x128xf32>
    %45 = math.tanh %44 : vector<8x128xf32>
    %46 = arith.mulf %41, %45 : vector<8x128xf32>
    %c2_i32 = arith.constant 2 : i32
    %47 = arith.index_cast %c2_i32 : i32 to index
    %c0_10 = arith.constant 0 : index
    %c0_11 = arith.constant 0 : index
    %48 = vector.load %arg0[%47, %c0_10, %c0_11] : memref<16x8x512xf32, #tpu.memory_space<vmem>>, vector<1x8x512xf32>
    %49 = vector.shape_cast %48 : vector<1x8x512xf32> to vector<8x512xf32>
    %50 = arith.truncf %46 : vector<8x128xf32> to vector<8x128xbf16>
    %cst_12 = arith.constant dense<0.000000e+00> : vector<8x512xf32>
    %51 = tpu.matmul %50, %0, %cst_12 {dimension_numbers = #tpu.dot_dimension_numbers<[1], [0], [0], [1], [0, 0, 1, 1], [], []>} : vector<8x128xbf16>, vector<128x512xbf16>, vector<8x512xf32> -> vector<8x512xf32>
    %52 = arith.addf %49, %51 : vector<8x512xf32>
    %53 = vector.extract_strided_slice %52 {offsets = [0, 0], sizes = [8, 384], strides = [1, 1]} : vector<8x512xf32> to vector<8x384xf32>
    %54 = arith.negf %53 : vector<8x384xf32>
    %55 = math.exp %54 : vector<8x384xf32>
    %cst_13 = arith.constant 1.000000e+00 : f32
    %56 = vector.broadcast %cst_13 : f32 to vector<8x384xf32>
    %57 = arith.addf %56, %55 : vector<8x384xf32>
    %58 = arith.divf %56, %57 : vector<8x384xf32>
    %59 = vector.extract_strided_slice %52 {offsets = [0, 384], sizes = [8, 128], strides = [1, 1]} : vector<8x512xf32> to vector<8x128xf32>
    %60 = math.tanh %59 : vector<8x128xf32>
    %61 = vector.extract_strided_slice %58 {offsets = [0, 0], sizes = [8, 128], strides = [1, 1]} : vector<8x384xf32> to vector<8x128xf32>
    %62 = vector.extract_strided_slice %58 {offsets = [0, 128], sizes = [8, 128], strides = [1, 1]} : vector<8x384xf32> to vector<8x128xf32>
    %63 = vector.extract_strided_slice %58 {offsets = [0, 256], sizes = [8, 128], strides = [1, 1]} : vector<8x384xf32> to vector<8x128xf32>
    %64 = arith.mulf %62, %44 : vector<8x128xf32>
    %65 = arith.mulf %61, %60 : vector<8x128xf32>
    %66 = arith.addf %64, %65 : vector<8x128xf32>
    %67 = math.tanh %66 : vector<8x128xf32>
    %68 = arith.mulf %63, %67 : vector<8x128xf32>
    %c3_i32 = arith.constant 3 : i32
    %69 = arith.index_cast %c3_i32 : i32 to index
    %c0_14 = arith.constant 0 : index
    %c0_15 = arith.constant 0 : index
    %70 = vector.load %arg0[%69, %c0_14, %c0_15] : memref<16x8x512xf32, #tpu.memory_space<vmem>>, vector<1x8x512xf32>
    %71 = vector.shape_cast %70 : vector<1x8x512xf32> to vector<8x512xf32>
    %72 = arith.truncf %68 : vector<8x128xf32> to vector<8x128xbf16>
    %cst_16 = arith.constant dense<0.000000e+00> : vector<8x512xf32>
    %73 = tpu.matmul %72, %0, %cst_16 {dimension_numbers = #tpu.dot_dimension_numbers<[1], [0], [0], [1], [0, 0, 1, 1], [], []>} : vector<8x128xbf16>, vector<128x512xbf16>, vector<8x512xf32> -> vector<8x512xf32>
    %74 = arith.addf %71, %73 : vector<8x512xf32>
    %75 = vector.extract_strided_slice %74 {offsets = [0, 0], sizes = [8, 384], strides = [1, 1]} : vector<8x512xf32> to vector<8x384xf32>
    %76 = arith.negf %75 : vector<8x384xf32>
    %77 = math.exp %76 : vector<8x384xf32>
    %cst_17 = arith.constant 1.000000e+00 : f32
    %78 = vector.broadcast %cst_17 : f32 to vector<8x384xf32>
    %79 = arith.addf %78, %77 : vector<8x384xf32>
    %80 = arith.divf %78, %79 : vector<8x384xf32>
    %81 = vector.extract_strided_slice %74 {offsets = [0, 384], sizes = [8, 128], strides = [1, 1]} : vector<8x512xf32> to vector<8x128xf32>
    %82 = math.tanh %81 : vector<8x128xf32>
    %83 = vector.extract_strided_slice %80 {offsets = [0, 0], sizes = [8, 128], strides = [1, 1]} : vector<8x384xf32> to vector<8x128xf32>
    %84 = vector.extract_strided_slice %80 {offsets = [0, 128], sizes = [8, 128], strides = [1, 1]} : vector<8x384xf32> to vector<8x128xf32>
    %85 = vector.extract_strided_slice %80 {offsets = [0, 256], sizes = [8, 128], strides = [1, 1]} : vector<8x384xf32> to vector<8x128xf32>
    %86 = arith.mulf %84, %66 : vector<8x128xf32>
    %87 = arith.mulf %83, %82 : vector<8x128xf32>
    %88 = arith.addf %86, %87 : vector<8x128xf32>
    %89 = math.tanh %88 : vector<8x128xf32>
    %90 = arith.mulf %85, %89 : vector<8x128xf32>
    %c4_i32 = arith.constant 4 : i32
    %91 = arith.index_cast %c4_i32 : i32 to index
    %c0_18 = arith.constant 0 : index
    %c0_19 = arith.constant 0 : index
    %92 = vector.load %arg0[%91, %c0_18, %c0_19] : memref<16x8x512xf32, #tpu.memory_space<vmem>>, vector<1x8x512xf32>
    %93 = vector.shape_cast %92 : vector<1x8x512xf32> to vector<8x512xf32>
    %94 = arith.truncf %90 : vector<8x128xf32> to vector<8x128xbf16>
    %cst_20 = arith.constant dense<0.000000e+00> : vector<8x512xf32>
    %95 = tpu.matmul %94, %0, %cst_20 {dimension_numbers = #tpu.dot_dimension_numbers<[1], [0], [0], [1], [0, 0, 1, 1], [], []>} : vector<8x128xbf16>, vector<128x512xbf16>, vector<8x512xf32> -> vector<8x512xf32>
    %96 = arith.addf %93, %95 : vector<8x512xf32>
    %97 = vector.extract_strided_slice %96 {offsets = [0, 0], sizes = [8, 384], strides = [1, 1]} : vector<8x512xf32> to vector<8x384xf32>
    %98 = arith.negf %97 : vector<8x384xf32>
    %99 = math.exp %98 : vector<8x384xf32>
    %cst_21 = arith.constant 1.000000e+00 : f32
    %100 = vector.broadcast %cst_21 : f32 to vector<8x384xf32>
    %101 = arith.addf %100, %99 : vector<8x384xf32>
    %102 = arith.divf %100, %101 : vector<8x384xf32>
    %103 = vector.extract_strided_slice %96 {offsets = [0, 384], sizes = [8, 128], strides = [1, 1]} : vector<8x512xf32> to vector<8x128xf32>
    %104 = math.tanh %103 : vector<8x128xf32>
    %105 = vector.extract_strided_slice %102 {offsets = [0, 0], sizes = [8, 128], strides = [1, 1]} : vector<8x384xf32> to vector<8x128xf32>
    %106 = vector.extract_strided_slice %102 {offsets = [0, 128], sizes = [8, 128], strides = [1, 1]} : vector<8x384xf32> to vector<8x128xf32>
    %107 = vector.extract_strided_slice %102 {offsets = [0, 256], sizes = [8, 128], strides = [1, 1]} : vector<8x384xf32> to vector<8x128xf32>
    %108 = arith.mulf %106, %88 : vector<8x128xf32>
    %109 = arith.mulf %105, %104 : vector<8x128xf32>
    %110 = arith.addf %108, %109 : vector<8x128xf32>
    %111 = math.tanh %110 : vector<8x128xf32>
    %112 = arith.mulf %107, %111 : vector<8x128xf32>
    %c5_i32 = arith.constant 5 : i32
    %113 = arith.index_cast %c5_i32 : i32 to index
    %c0_22 = arith.constant 0 : index
    %c0_23 = arith.constant 0 : index
    %114 = vector.load %arg0[%113, %c0_22, %c0_23] : memref<16x8x512xf32, #tpu.memory_space<vmem>>, vector<1x8x512xf32>
    %115 = vector.shape_cast %114 : vector<1x8x512xf32> to vector<8x512xf32>
    %116 = arith.truncf %112 : vector<8x128xf32> to vector<8x128xbf16>
    %cst_24 = arith.constant dense<0.000000e+00> : vector<8x512xf32>
    %117 = tpu.matmul %116, %0, %cst_24 {dimension_numbers = #tpu.dot_dimension_numbers<[1], [0], [0], [1], [0, 0, 1, 1], [], []>} : vector<8x128xbf16>, vector<128x512xbf16>, vector<8x512xf32> -> vector<8x512xf32>
    %118 = arith.addf %115, %117 : vector<8x512xf32>
    %119 = vector.extract_strided_slice %118 {offsets = [0, 0], sizes = [8, 384], strides = [1, 1]} : vector<8x512xf32> to vector<8x384xf32>
    %120 = arith.negf %119 : vector<8x384xf32>
    %121 = math.exp %120 : vector<8x384xf32>
    %cst_25 = arith.constant 1.000000e+00 : f32
    %122 = vector.broadcast %cst_25 : f32 to vector<8x384xf32>
    %123 = arith.addf %122, %121 : vector<8x384xf32>
    %124 = arith.divf %122, %123 : vector<8x384xf32>
    %125 = vector.extract_strided_slice %118 {offsets = [0, 384], sizes = [8, 128], strides = [1, 1]} : vector<8x512xf32> to vector<8x128xf32>
    %126 = math.tanh %125 : vector<8x128xf32>
    %127 = vector.extract_strided_slice %124 {offsets = [0, 0], sizes = [8, 128], strides = [1, 1]} : vector<8x384xf32> to vector<8x128xf32>
    %128 = vector.extract_strided_slice %124 {offsets = [0, 128], sizes = [8, 128], strides = [1, 1]} : vector<8x384xf32> to vector<8x128xf32>
    %129 = vector.extract_strided_slice %124 {offsets = [0, 256], sizes = [8, 128], strides = [1, 1]} : vector<8x384xf32> to vector<8x128xf32>
    %130 = arith.mulf %128, %110 : vector<8x128xf32>
    %131 = arith.mulf %127, %126 : vector<8x128xf32>
    %132 = arith.addf %130, %131 : vector<8x128xf32>
    %133 = math.tanh %132 : vector<8x128xf32>
    %134 = arith.mulf %129, %133 : vector<8x128xf32>
    %c6_i32 = arith.constant 6 : i32
    %135 = arith.index_cast %c6_i32 : i32 to index
    %c0_26 = arith.constant 0 : index
    %c0_27 = arith.constant 0 : index
    %136 = vector.load %arg0[%135, %c0_26, %c0_27] : memref<16x8x512xf32, #tpu.memory_space<vmem>>, vector<1x8x512xf32>
    %137 = vector.shape_cast %136 : vector<1x8x512xf32> to vector<8x512xf32>
    %138 = arith.truncf %134 : vector<8x128xf32> to vector<8x128xbf16>
    %cst_28 = arith.constant dense<0.000000e+00> : vector<8x512xf32>
    %139 = tpu.matmul %138, %0, %cst_28 {dimension_numbers = #tpu.dot_dimension_numbers<[1], [0], [0], [1], [0, 0, 1, 1], [], []>} : vector<8x128xbf16>, vector<128x512xbf16>, vector<8x512xf32> -> vector<8x512xf32>
    %140 = arith.addf %137, %139 : vector<8x512xf32>
    %141 = vector.extract_strided_slice %140 {offsets = [0, 0], sizes = [8, 384], strides = [1, 1]} : vector<8x512xf32> to vector<8x384xf32>
    %142 = arith.negf %141 : vector<8x384xf32>
    %143 = math.exp %142 : vector<8x384xf32>
    %cst_29 = arith.constant 1.000000e+00 : f32
    %144 = vector.broadcast %cst_29 : f32 to vector<8x384xf32>
    %145 = arith.addf %144, %143 : vector<8x384xf32>
    %146 = arith.divf %144, %145 : vector<8x384xf32>
    %147 = vector.extract_strided_slice %140 {offsets = [0, 384], sizes = [8, 128], strides = [1, 1]} : vector<8x512xf32> to vector<8x128xf32>
    %148 = math.tanh %147 : vector<8x128xf32>
    %149 = vector.extract_strided_slice %146 {offsets = [0, 0], sizes = [8, 128], strides = [1, 1]} : vector<8x384xf32> to vector<8x128xf32>
    %150 = vector.extract_strided_slice %146 {offsets = [0, 128], sizes = [8, 128], strides = [1, 1]} : vector<8x384xf32> to vector<8x128xf32>
    %151 = vector.extract_strided_slice %146 {offsets = [0, 256], sizes = [8, 128], strides = [1, 1]} : vector<8x384xf32> to vector<8x128xf32>
    %152 = arith.mulf %150, %132 : vector<8x128xf32>
    %153 = arith.mulf %149, %148 : vector<8x128xf32>
    %154 = arith.addf %152, %153 : vector<8x128xf32>
    %155 = math.tanh %154 : vector<8x128xf32>
    %156 = arith.mulf %151, %155 : vector<8x128xf32>
    %c7_i32 = arith.constant 7 : i32
    %157 = arith.index_cast %c7_i32 : i32 to index
    %c0_30 = arith.constant 0 : index
    %c0_31 = arith.constant 0 : index
    %158 = vector.load %arg0[%157, %c0_30, %c0_31] : memref<16x8x512xf32, #tpu.memory_space<vmem>>, vector<1x8x512xf32>
    %159 = vector.shape_cast %158 : vector<1x8x512xf32> to vector<8x512xf32>
    %160 = arith.truncf %156 : vector<8x128xf32> to vector<8x128xbf16>
    %cst_32 = arith.constant dense<0.000000e+00> : vector<8x512xf32>
    %161 = tpu.matmul %160, %0, %cst_32 {dimension_numbers = #tpu.dot_dimension_numbers<[1], [0], [0], [1], [0, 0, 1, 1], [], []>} : vector<8x128xbf16>, vector<128x512xbf16>, vector<8x512xf32> -> vector<8x512xf32>
    %162 = arith.addf %159, %161 : vector<8x512xf32>
    %163 = vector.extract_strided_slice %162 {offsets = [0, 0], sizes = [8, 384], strides = [1, 1]} : vector<8x512xf32> to vector<8x384xf32>
    %164 = arith.negf %163 : vector<8x384xf32>
    %165 = math.exp %164 : vector<8x384xf32>
    %cst_33 = arith.constant 1.000000e+00 : f32
    %166 = vector.broadcast %cst_33 : f32 to vector<8x384xf32>
    %167 = arith.addf %166, %165 : vector<8x384xf32>
    %168 = arith.divf %166, %167 : vector<8x384xf32>
    %169 = vector.extract_strided_slice %162 {offsets = [0, 384], sizes = [8, 128], strides = [1, 1]} : vector<8x512xf32> to vector<8x128xf32>
    %170 = math.tanh %169 : vector<8x128xf32>
    %171 = vector.extract_strided_slice %168 {offsets = [0, 0], sizes = [8, 128], strides = [1, 1]} : vector<8x384xf32> to vector<8x128xf32>
    %172 = vector.extract_strided_slice %168 {offsets = [0, 128], sizes = [8, 128], strides = [1, 1]} : vector<8x384xf32> to vector<8x128xf32>
    %173 = vector.extract_strided_slice %168 {offsets = [0, 256], sizes = [8, 128], strides = [1, 1]} : vector<8x384xf32> to vector<8x128xf32>
    %174 = arith.mulf %172, %154 : vector<8x128xf32>
    %175 = arith.mulf %171, %170 : vector<8x128xf32>
    %176 = arith.addf %174, %175 : vector<8x128xf32>
    %177 = math.tanh %176 : vector<8x128xf32>
    %178 = arith.mulf %173, %177 : vector<8x128xf32>
    %c8_i32 = arith.constant 8 : i32
    %179 = arith.index_cast %c8_i32 : i32 to index
    %c0_34 = arith.constant 0 : index
    %c0_35 = arith.constant 0 : index
    %180 = vector.load %arg0[%179, %c0_34, %c0_35] : memref<16x8x512xf32, #tpu.memory_space<vmem>>, vector<1x8x512xf32>
    %181 = vector.shape_cast %180 : vector<1x8x512xf32> to vector<8x512xf32>
    %182 = arith.truncf %178 : vector<8x128xf32> to vector<8x128xbf16>
    %cst_36 = arith.constant dense<0.000000e+00> : vector<8x512xf32>
    %183 = tpu.matmul %182, %0, %cst_36 {dimension_numbers = #tpu.dot_dimension_numbers<[1], [0], [0], [1], [0, 0, 1, 1], [], []>} : vector<8x128xbf16>, vector<128x512xbf16>, vector<8x512xf32> -> vector<8x512xf32>
    %184 = arith.addf %181, %183 : vector<8x512xf32>
    %185 = vector.extract_strided_slice %184 {offsets = [0, 0], sizes = [8, 384], strides = [1, 1]} : vector<8x512xf32> to vector<8x384xf32>
    %186 = arith.negf %185 : vector<8x384xf32>
    %187 = math.exp %186 : vector<8x384xf32>
    %cst_37 = arith.constant 1.000000e+00 : f32
    %188 = vector.broadcast %cst_37 : f32 to vector<8x384xf32>
    %189 = arith.addf %188, %187 : vector<8x384xf32>
    %190 = arith.divf %188, %189 : vector<8x384xf32>
    %191 = vector.extract_strided_slice %184 {offsets = [0, 384], sizes = [8, 128], strides = [1, 1]} : vector<8x512xf32> to vector<8x128xf32>
    %192 = math.tanh %191 : vector<8x128xf32>
    %193 = vector.extract_strided_slice %190 {offsets = [0, 0], sizes = [8, 128], strides = [1, 1]} : vector<8x384xf32> to vector<8x128xf32>
    %194 = vector.extract_strided_slice %190 {offsets = [0, 128], sizes = [8, 128], strides = [1, 1]} : vector<8x384xf32> to vector<8x128xf32>
    %195 = vector.extract_strided_slice %190 {offsets = [0, 256], sizes = [8, 128], strides = [1, 1]} : vector<8x384xf32> to vector<8x128xf32>
    %196 = arith.mulf %194, %176 : vector<8x128xf32>
    %197 = arith.mulf %193, %192 : vector<8x128xf32>
    %198 = arith.addf %196, %197 : vector<8x128xf32>
    %199 = math.tanh %198 : vector<8x128xf32>
    %200 = arith.mulf %195, %199 : vector<8x128xf32>
    %c9_i32 = arith.constant 9 : i32
    %201 = arith.index_cast %c9_i32 : i32 to index
    %c0_38 = arith.constant 0 : index
    %c0_39 = arith.constant 0 : index
    %202 = vector.load %arg0[%201, %c0_38, %c0_39] : memref<16x8x512xf32, #tpu.memory_space<vmem>>, vector<1x8x512xf32>
    %203 = vector.shape_cast %202 : vector<1x8x512xf32> to vector<8x512xf32>
    %204 = arith.truncf %200 : vector<8x128xf32> to vector<8x128xbf16>
    %cst_40 = arith.constant dense<0.000000e+00> : vector<8x512xf32>
    %205 = tpu.matmul %204, %0, %cst_40 {dimension_numbers = #tpu.dot_dimension_numbers<[1], [0], [0], [1], [0, 0, 1, 1], [], []>} : vector<8x128xbf16>, vector<128x512xbf16>, vector<8x512xf32> -> vector<8x512xf32>
    %206 = arith.addf %203, %205 : vector<8x512xf32>
    %207 = vector.extract_strided_slice %206 {offsets = [0, 0], sizes = [8, 384], strides = [1, 1]} : vector<8x512xf32> to vector<8x384xf32>
    %208 = arith.negf %207 : vector<8x384xf32>
    %209 = math.exp %208 : vector<8x384xf32>
    %cst_41 = arith.constant 1.000000e+00 : f32
    %210 = vector.broadcast %cst_41 : f32 to vector<8x384xf32>
    %211 = arith.addf %210, %209 : vector<8x384xf32>
    %212 = arith.divf %210, %211 : vector<8x384xf32>
    %213 = vector.extract_strided_slice %206 {offsets = [0, 384], sizes = [8, 128], strides = [1, 1]} : vector<8x512xf32> to vector<8x128xf32>
    %214 = math.tanh %213 : vector<8x128xf32>
    %215 = vector.extract_strided_slice %212 {offsets = [0, 0], sizes = [8, 128], strides = [1, 1]} : vector<8x384xf32> to vector<8x128xf32>
    %216 = vector.extract_strided_slice %212 {offsets = [0, 128], sizes = [8, 128], strides = [1, 1]} : vector<8x384xf32> to vector<8x128xf32>
    %217 = vector.extract_strided_slice %212 {offsets = [0, 256], sizes = [8, 128], strides = [1, 1]} : vector<8x384xf32> to vector<8x128xf32>
    %218 = arith.mulf %216, %198 : vector<8x128xf32>
    %219 = arith.mulf %215, %214 : vector<8x128xf32>
    %220 = arith.addf %218, %219 : vector<8x128xf32>
    %221 = math.tanh %220 : vector<8x128xf32>
    %222 = arith.mulf %217, %221 : vector<8x128xf32>
    %c10_i32 = arith.constant 10 : i32
    %223 = arith.index_cast %c10_i32 : i32 to index
    %c0_42 = arith.constant 0 : index
    %c0_43 = arith.constant 0 : index
    %224 = vector.load %arg0[%223, %c0_42, %c0_43] : memref<16x8x512xf32, #tpu.memory_space<vmem>>, vector<1x8x512xf32>
    %225 = vector.shape_cast %224 : vector<1x8x512xf32> to vector<8x512xf32>
    %226 = arith.truncf %222 : vector<8x128xf32> to vector<8x128xbf16>
    %cst_44 = arith.constant dense<0.000000e+00> : vector<8x512xf32>
    %227 = tpu.matmul %226, %0, %cst_44 {dimension_numbers = #tpu.dot_dimension_numbers<[1], [0], [0], [1], [0, 0, 1, 1], [], []>} : vector<8x128xbf16>, vector<128x512xbf16>, vector<8x512xf32> -> vector<8x512xf32>
    %228 = arith.addf %225, %227 : vector<8x512xf32>
    %229 = vector.extract_strided_slice %228 {offsets = [0, 0], sizes = [8, 384], strides = [1, 1]} : vector<8x512xf32> to vector<8x384xf32>
    %230 = arith.negf %229 : vector<8x384xf32>
    %231 = math.exp %230 : vector<8x384xf32>
    %cst_45 = arith.constant 1.000000e+00 : f32
    %232 = vector.broadcast %cst_45 : f32 to vector<8x384xf32>
    %233 = arith.addf %232, %231 : vector<8x384xf32>
    %234 = arith.divf %232, %233 : vector<8x384xf32>
    %235 = vector.extract_strided_slice %228 {offsets = [0, 384], sizes = [8, 128], strides = [1, 1]} : vector<8x512xf32> to vector<8x128xf32>
    %236 = math.tanh %235 : vector<8x128xf32>
    %237 = vector.extract_strided_slice %234 {offsets = [0, 0], sizes = [8, 128], strides = [1, 1]} : vector<8x384xf32> to vector<8x128xf32>
    %238 = vector.extract_strided_slice %234 {offsets = [0, 128], sizes = [8, 128], strides = [1, 1]} : vector<8x384xf32> to vector<8x128xf32>
    %239 = vector.extract_strided_slice %234 {offsets = [0, 256], sizes = [8, 128], strides = [1, 1]} : vector<8x384xf32> to vector<8x128xf32>
    %240 = arith.mulf %238, %220 : vector<8x128xf32>
    %241 = arith.mulf %237, %236 : vector<8x128xf32>
    %242 = arith.addf %240, %241 : vector<8x128xf32>
    %243 = math.tanh %242 : vector<8x128xf32>
    %244 = arith.mulf %239, %243 : vector<8x128xf32>
    %c11_i32 = arith.constant 11 : i32
    %245 = arith.index_cast %c11_i32 : i32 to index
    %c0_46 = arith.constant 0 : index
    %c0_47 = arith.constant 0 : index
    %246 = vector.load %arg0[%245, %c0_46, %c0_47] : memref<16x8x512xf32, #tpu.memory_space<vmem>>, vector<1x8x512xf32>
    %247 = vector.shape_cast %246 : vector<1x8x512xf32> to vector<8x512xf32>
    %248 = arith.truncf %244 : vector<8x128xf32> to vector<8x128xbf16>
    %cst_48 = arith.constant dense<0.000000e+00> : vector<8x512xf32>
    %249 = tpu.matmul %248, %0, %cst_48 {dimension_numbers = #tpu.dot_dimension_numbers<[1], [0], [0], [1], [0, 0, 1, 1], [], []>} : vector<8x128xbf16>, vector<128x512xbf16>, vector<8x512xf32> -> vector<8x512xf32>
    %250 = arith.addf %247, %249 : vector<8x512xf32>
    %251 = vector.extract_strided_slice %250 {offsets = [0, 0], sizes = [8, 384], strides = [1, 1]} : vector<8x512xf32> to vector<8x384xf32>
    %252 = arith.negf %251 : vector<8x384xf32>
    %253 = math.exp %252 : vector<8x384xf32>
    %cst_49 = arith.constant 1.000000e+00 : f32
    %254 = vector.broadcast %cst_49 : f32 to vector<8x384xf32>
    %255 = arith.addf %254, %253 : vector<8x384xf32>
    %256 = arith.divf %254, %255 : vector<8x384xf32>
    %257 = vector.extract_strided_slice %250 {offsets = [0, 384], sizes = [8, 128], strides = [1, 1]} : vector<8x512xf32> to vector<8x128xf32>
    %258 = math.tanh %257 : vector<8x128xf32>
    %259 = vector.extract_strided_slice %256 {offsets = [0, 0], sizes = [8, 128], strides = [1, 1]} : vector<8x384xf32> to vector<8x128xf32>
    %260 = vector.extract_strided_slice %256 {offsets = [0, 128], sizes = [8, 128], strides = [1, 1]} : vector<8x384xf32> to vector<8x128xf32>
    %261 = vector.extract_strided_slice %256 {offsets = [0, 256], sizes = [8, 128], strides = [1, 1]} : vector<8x384xf32> to vector<8x128xf32>
    %262 = arith.mulf %260, %242 : vector<8x128xf32>
    %263 = arith.mulf %259, %258 : vector<8x128xf32>
    %264 = arith.addf %262, %263 : vector<8x128xf32>
    %265 = math.tanh %264 : vector<8x128xf32>
    %266 = arith.mulf %261, %265 : vector<8x128xf32>
    %c12_i32 = arith.constant 12 : i32
    %267 = arith.index_cast %c12_i32 : i32 to index
    %c0_50 = arith.constant 0 : index
    %c0_51 = arith.constant 0 : index
    %268 = vector.load %arg0[%267, %c0_50, %c0_51] : memref<16x8x512xf32, #tpu.memory_space<vmem>>, vector<1x8x512xf32>
    %269 = vector.shape_cast %268 : vector<1x8x512xf32> to vector<8x512xf32>
    %270 = arith.truncf %266 : vector<8x128xf32> to vector<8x128xbf16>
    %cst_52 = arith.constant dense<0.000000e+00> : vector<8x512xf32>
    %271 = tpu.matmul %270, %0, %cst_52 {dimension_numbers = #tpu.dot_dimension_numbers<[1], [0], [0], [1], [0, 0, 1, 1], [], []>} : vector<8x128xbf16>, vector<128x512xbf16>, vector<8x512xf32> -> vector<8x512xf32>
    %272 = arith.addf %269, %271 : vector<8x512xf32>
    %273 = vector.extract_strided_slice %272 {offsets = [0, 0], sizes = [8, 384], strides = [1, 1]} : vector<8x512xf32> to vector<8x384xf32>
    %274 = arith.negf %273 : vector<8x384xf32>
    %275 = math.exp %274 : vector<8x384xf32>
    %cst_53 = arith.constant 1.000000e+00 : f32
    %276 = vector.broadcast %cst_53 : f32 to vector<8x384xf32>
    %277 = arith.addf %276, %275 : vector<8x384xf32>
    %278 = arith.divf %276, %277 : vector<8x384xf32>
    %279 = vector.extract_strided_slice %272 {offsets = [0, 384], sizes = [8, 128], strides = [1, 1]} : vector<8x512xf32> to vector<8x128xf32>
    %280 = math.tanh %279 : vector<8x128xf32>
    %281 = vector.extract_strided_slice %278 {offsets = [0, 0], sizes = [8, 128], strides = [1, 1]} : vector<8x384xf32> to vector<8x128xf32>
    %282 = vector.extract_strided_slice %278 {offsets = [0, 128], sizes = [8, 128], strides = [1, 1]} : vector<8x384xf32> to vector<8x128xf32>
    %283 = vector.extract_strided_slice %278 {offsets = [0, 256], sizes = [8, 128], strides = [1, 1]} : vector<8x384xf32> to vector<8x128xf32>
    %284 = arith.mulf %282, %264 : vector<8x128xf32>
    %285 = arith.mulf %281, %280 : vector<8x128xf32>
    %286 = arith.addf %284, %285 : vector<8x128xf32>
    %287 = math.tanh %286 : vector<8x128xf32>
    %288 = arith.mulf %283, %287 : vector<8x128xf32>
    %c13_i32 = arith.constant 13 : i32
    %289 = arith.index_cast %c13_i32 : i32 to index
    %c0_54 = arith.constant 0 : index
    %c0_55 = arith.constant 0 : index
    %290 = vector.load %arg0[%289, %c0_54, %c0_55] : memref<16x8x512xf32, #tpu.memory_space<vmem>>, vector<1x8x512xf32>
    %291 = vector.shape_cast %290 : vector<1x8x512xf32> to vector<8x512xf32>
    %292 = arith.truncf %288 : vector<8x128xf32> to vector<8x128xbf16>
    %cst_56 = arith.constant dense<0.000000e+00> : vector<8x512xf32>
    %293 = tpu.matmul %292, %0, %cst_56 {dimension_numbers = #tpu.dot_dimension_numbers<[1], [0], [0], [1], [0, 0, 1, 1], [], []>} : vector<8x128xbf16>, vector<128x512xbf16>, vector<8x512xf32> -> vector<8x512xf32>
    %294 = arith.addf %291, %293 : vector<8x512xf32>
    %295 = vector.extract_strided_slice %294 {offsets = [0, 0], sizes = [8, 384], strides = [1, 1]} : vector<8x512xf32> to vector<8x384xf32>
    %296 = arith.negf %295 : vector<8x384xf32>
    %297 = math.exp %296 : vector<8x384xf32>
    %cst_57 = arith.constant 1.000000e+00 : f32
    %298 = vector.broadcast %cst_57 : f32 to vector<8x384xf32>
    %299 = arith.addf %298, %297 : vector<8x384xf32>
    %300 = arith.divf %298, %299 : vector<8x384xf32>
    %301 = vector.extract_strided_slice %294 {offsets = [0, 384], sizes = [8, 128], strides = [1, 1]} : vector<8x512xf32> to vector<8x128xf32>
    %302 = math.tanh %301 : vector<8x128xf32>
    %303 = vector.extract_strided_slice %300 {offsets = [0, 0], sizes = [8, 128], strides = [1, 1]} : vector<8x384xf32> to vector<8x128xf32>
    %304 = vector.extract_strided_slice %300 {offsets = [0, 128], sizes = [8, 128], strides = [1, 1]} : vector<8x384xf32> to vector<8x128xf32>
    %305 = vector.extract_strided_slice %300 {offsets = [0, 256], sizes = [8, 128], strides = [1, 1]} : vector<8x384xf32> to vector<8x128xf32>
    %306 = arith.mulf %304, %286 : vector<8x128xf32>
    %307 = arith.mulf %303, %302 : vector<8x128xf32>
    %308 = arith.addf %306, %307 : vector<8x128xf32>
    %309 = math.tanh %308 : vector<8x128xf32>
    %310 = arith.mulf %305, %309 : vector<8x128xf32>
    %c14_i32 = arith.constant 14 : i32
    %311 = arith.index_cast %c14_i32 : i32 to index
    %c0_58 = arith.constant 0 : index
    %c0_59 = arith.constant 0 : index
    %312 = vector.load %arg0[%311, %c0_58, %c0_59] : memref<16x8x512xf32, #tpu.memory_space<vmem>>, vector<1x8x512xf32>
    %313 = vector.shape_cast %312 : vector<1x8x512xf32> to vector<8x512xf32>
    %314 = arith.truncf %310 : vector<8x128xf32> to vector<8x128xbf16>
    %cst_60 = arith.constant dense<0.000000e+00> : vector<8x512xf32>
    %315 = tpu.matmul %314, %0, %cst_60 {dimension_numbers = #tpu.dot_dimension_numbers<[1], [0], [0], [1], [0, 0, 1, 1], [], []>} : vector<8x128xbf16>, vector<128x512xbf16>, vector<8x512xf32> -> vector<8x512xf32>
    %316 = arith.addf %313, %315 : vector<8x512xf32>
    %317 = vector.extract_strided_slice %316 {offsets = [0, 0], sizes = [8, 384], strides = [1, 1]} : vector<8x512xf32> to vector<8x384xf32>
    %318 = arith.negf %317 : vector<8x384xf32>
    %319 = math.exp %318 : vector<8x384xf32>
    %cst_61 = arith.constant 1.000000e+00 : f32
    %320 = vector.broadcast %cst_61 : f32 to vector<8x384xf32>
    %321 = arith.addf %320, %319 : vector<8x384xf32>
    %322 = arith.divf %320, %321 : vector<8x384xf32>
    %323 = vector.extract_strided_slice %316 {offsets = [0, 384], sizes = [8, 128], strides = [1, 1]} : vector<8x512xf32> to vector<8x128xf32>
    %324 = math.tanh %323 : vector<8x128xf32>
    %325 = vector.extract_strided_slice %322 {offsets = [0, 0], sizes = [8, 128], strides = [1, 1]} : vector<8x384xf32> to vector<8x128xf32>
    %326 = vector.extract_strided_slice %322 {offsets = [0, 128], sizes = [8, 128], strides = [1, 1]} : vector<8x384xf32> to vector<8x128xf32>
    %327 = vector.extract_strided_slice %322 {offsets = [0, 256], sizes = [8, 128], strides = [1, 1]} : vector<8x384xf32> to vector<8x128xf32>
    %328 = arith.mulf %326, %308 : vector<8x128xf32>
    %329 = arith.mulf %325, %324 : vector<8x128xf32>
    %330 = arith.addf %328, %329 : vector<8x128xf32>
    %331 = math.tanh %330 : vector<8x128xf32>
    %332 = arith.mulf %327, %331 : vector<8x128xf32>
    %c15_i32 = arith.constant 15 : i32
    %333 = arith.index_cast %c15_i32 : i32 to index
    %c0_62 = arith.constant 0 : index
    %c0_63 = arith.constant 0 : index
    %334 = vector.load %arg0[%333, %c0_62, %c0_63] : memref<16x8x512xf32, #tpu.memory_space<vmem>>, vector<1x8x512xf32>
    %335 = vector.shape_cast %334 : vector<1x8x512xf32> to vector<8x512xf32>
    %336 = arith.truncf %332 : vector<8x128xf32> to vector<8x128xbf16>
    %cst_64 = arith.constant dense<0.000000e+00> : vector<8x512xf32>
    %337 = tpu.matmul %336, %0, %cst_64 {dimension_numbers = #tpu.dot_dimension_numbers<[1], [0], [0], [1], [0, 0, 1, 1], [], []>} : vector<8x128xbf16>, vector<128x512xbf16>, vector<8x512xf32> -> vector<8x512xf32>
    %338 = arith.addf %335, %337 : vector<8x512xf32>
    %339 = vector.extract_strided_slice %338 {offsets = [0, 0], sizes = [8, 384], strides = [1, 1]} : vector<8x512xf32> to vector<8x384xf32>
    %340 = arith.negf %339 : vector<8x384xf32>
    %341 = math.exp %340 : vector<8x384xf32>
    %cst_65 = arith.constant 1.000000e+00 : f32
    %342 = vector.broadcast %cst_65 : f32 to vector<8x384xf32>
    %343 = arith.addf %342, %341 : vector<8x384xf32>
    %344 = arith.divf %342, %343 : vector<8x384xf32>
    %345 = vector.extract_strided_slice %338 {offsets = [0, 384], sizes = [8, 128], strides = [1, 1]} : vector<8x512xf32> to vector<8x128xf32>
    %346 = math.tanh %345 : vector<8x128xf32>
    %347 = vector.extract_strided_slice %344 {offsets = [0, 0], sizes = [8, 128], strides = [1, 1]} : vector<8x384xf32> to vector<8x128xf32>
    %348 = vector.extract_strided_slice %344 {offsets = [0, 128], sizes = [8, 128], strides = [1, 1]} : vector<8x384xf32> to vector<8x128xf32>
    %349 = vector.extract_strided_slice %344 {offsets = [0, 256], sizes = [8, 128], strides = [1, 1]} : vector<8x384xf32> to vector<8x128xf32>
    %350 = arith.mulf %348, %330 : vector<8x128xf32>
    %351 = arith.mulf %347, %346 : vector<8x128xf32>
    %352 = arith.addf %350, %351 : vector<8x128xf32>
    %353 = math.tanh %352 : vector<8x128xf32>
    %354 = arith.mulf %349, %353 : vector<8x128xf32>
    %c16_i32 = arith.constant 16 : i32
    %c0_66 = arith.constant 0 : index
    %c0_67 = arith.constant 0 : index
    %355 = vector.load %arg2[%c0_66, %c0_67] : memref<8x128xf32, #tpu.memory_space<vmem>>, vector<8x128xf32>
    tpu.vector_store %arg2[%c0_66, %c0_67], %354 {strides = array<i32>} : memref<8x128xf32, #tpu.memory_space<vmem>>, vector<8x128xf32>,
    return
  }
}

</mosaic_0001>

<bundles_post_ra>
// kernel: tpu_custom_call.1
= control target key start
LH: loop header
LB: loop body
LE: loop exit
PB: predicated region body
PF: predicated region fallthrough
CT: control target
= control target key end

     0   :  { %7 = vsyncpa [#allocation3], 0  ;;  %s3482_s0 = inlined_call_operand.hbm [shape: f32[16,8,512], index: 0, kind: input, shape index: {}]   ;;  %s3483_s1 = inlined_call_operand.hbm [shape: bf16[128,512], index: 1, kind: input, shape index: {}]   ;;  %s3484_s2 = inlined_call_operand.hbm [shape: f32[8,128], index: 2, kind: output, shape index: {}]  }
   0x1   :  { %8 = vsyncpa [#allocation6], 0 }
   0x2   :  { %9 = vsyncpa [#allocation4], 0  ;;  %s2632_s9 = smov [#allocation2]   ;;  %s2560_s13 = scalar_lea.hbm %s3482_s0, 8192 }
   0x3   :  { %s15_s10 = sshll.u32 %s2632_s9, 4  ;;  %p2561_p0 = scmp.ne.s32.totalorder %s3482_s0, %s2560_s13  ;;  %s16_s10 = int_to_ptr.vmem [resolvable:$true] %s15_s10 }
   0x4   :  { %p2564_p1 = scmp.lt.u32.totalorder %s2560_s13, %s3482_s0 }
   0x6   :  { %p2566_p2 = pnand %p2564_p1, %p2561_p0 }
   0x8   :  { %2569 = shalt.err (!%p2566_p2)
}
   0x9   :  { %s2570_s18 = scalar_lea.vmem %s16_s10, 8192  ;;  %p2575_p4 = scmp.lt.s32.totalorder %s16_s10, %s16_s10 }
   0xa   :  { %p2571_p3 = scmp.ne.s32.totalorder %s16_s10, %s2570_s18  ;;  %p2576_p5 = scmp.lt.s32.totalorder %s2570_s18, %s2570_s18 }
   0xc   :  { %p2577_p6 = por %p2576_p5, %p2575_p4 }
   0xe   :  { %p2578_p7 = pnand %p2577_p6, %p2571_p3 }
  0x10   :  { %2581 = shalt.err (!%p2578_p7)
}
  0x11   :  { %s2633_s19 = smov 512   ;;  %s2634_s20 = smov 32  }
  0x12   :  { %21 = dma.hbm_to_vmem [thread:$0]  %s3482_s0, 8192, %s16_s10, [#allocation3], %s2633_s19, %s2633_s19, %s2634_s20  }
  0x13   :  { %s2635_s23 = smov [#allocation5]   ;;  %s2582_s27 = scalar_lea.hbm %s3483_s1, 4096 }
  0x14   :  { %s27_s24 = sshll.u32 %s2635_s23, 4  ;;  %p2583_p8 = scmp.ne.s32.totalorder %s3483_s1, %s2582_s27  ;;  %s28_s24 = int_to_ptr.vmem [resolvable:$true] %s27_s24 }
  0x15   :  { %p2586_p9 = scmp.lt.u32.totalorder %s2582_s27, %s3483_s1 }
  0x17   :  { %p2588_p10 = pnand %p2586_p9, %p2583_p8 }
  0x19   :  { %2591 = shalt.err (!%p2588_p10)
}
  0x1a   :  { %s2592_s4 = scalar_lea.vmem %s28_s24, 4096  ;;  %p2597_p12 = scmp.lt.s32.totalorder %s28_s24, %s28_s24 }
  0x1b   :  { %p2593_p11 = scmp.ne.s32.totalorder %s28_s24, %s2592_s4  ;;  %p2598_p13 = scmp.lt.s32.totalorder %s2592_s4, %s2592_s4 }
  0x1d   :  { %p2599_p0 = por %p2598_p13, %p2597_p12 }
  0x1f   :  { %p2600_p1 = pnand %p2599_p0, %p2593_p11 }
  0x21   :  { %2603 = shalt.err (!%p2600_p1)
}
  0x22   :  { %s2636_s0 = smov 256   ;;  %s2637_s5 = smov 16  }
  0x23   :  { %33 = dma.hbm_to_vmem [thread:$0]  %s3483_s1, 4096, %s28_s24, [#allocation6], %s2636_s0, %s2636_s0, %s2637_s5  }
  0x24   :  { %2626 = dma.done.wait [#allocation3], 8192  }
  0x25   :  { %2627 = vsyncadd [#allocation3], 4294959104 }
  0x26   :  { %2628 = dma.done.wait [#allocation6], 4096  }
  0x27   :  { %2629 = vsyncadd [#allocation6], 4294963200  ;;  %v2638_v0 = vmov 0   ;;  %v2681_v1 = vld [vmem:[#allocation5 + $0x4] ss:$16 sps:$4 sm:$0xff]   ;;  %v74_v34 = vld [vmem:[#allocation2 + $0x8] sm:$0xff] }
  0x28   :  { %269 = vmatprep.mubr.bf16.mxu0 %v2638_v0  ;;  %310 = vmatprep.mubr.bf16.mxu1 %v2638_v0  ;;  %v2683_v2 = vld [vmem:[#allocation5] ss:$16 sps:$4 sm:$0xff]   ;;  %v2686_v3 = vld [vmem:[#allocation5 + $0x24] ss:$16 sps:$4 sm:$0xff]   ;;  %v2694_v6 = vld [vmem:[#allocation5 + $0xc] ss:$16 sps:$4 sm:$0xff]  }
  0x29   :  { %237 = vmatprep.subr.bf16.mxu0 %v2681_v1  ;;  %v2689_v4 = vld [vmem:[#allocation5 + $0x20] ss:$16 sps:$4 sm:$0xff]   ;;  %v2692_v5 = vld [vmem:[#allocation5 + $0x44] ss:$16 sps:$4 sm:$0xff]   ;;  %v2696_v7 = vld [vmem:[#allocation5 + $0x8] ss:$16 sps:$4 sm:$0xff]   ;;  %278 = vmatprep.subr.bf16.mxu1 %v2694_v6 }
  0x2a   :  { %238 = vmatpush1.bf16.msra.mxu0 %v2683_v2  ;;  %v2699_v8 = vld [vmem:[#allocation5 + $0x40] ss:$16 sps:$4 sm:$0xff]   ;;  %v2703_v9 = vld [vmem:[#allocation5 + $0x64] ss:$16 sps:$4 sm:$0xff]   ;;  %279 = vmatpush1.bf16.msra.mxu1 %v2696_v7  ;;  %v2706_v10 = vld [vmem:[#allocation5 + $0x2c] ss:$16 sps:$4 sm:$0xff]  }
  0x2b   :  { %239 = vmatprep.subr.bf16.mxu0 %v2686_v3  ;;  %v2708_v11 = vld [vmem:[#allocation5 + $0x28] ss:$16 sps:$4 sm:$0xff]   ;;  %280 = vmatprep.subr.bf16.mxu1 %v2706_v10  ;;  %v2712_v12 = vld [vmem:[#allocation5 + $0x60] ss:$16 sps:$4 sm:$0xff]   ;;  %v2714_v13 = vld [vmem:[#allocation5 + $0x84] ss:$16 sps:$4 sm:$0xff]  }
  0x2c   :  { %v2716_v14 = vld [vmem:[#allocation5 + $0x4c] ss:$16 sps:$4 sm:$0xff]   ;;  %v2720_v15 = vld [vmem:[#allocation5 + $0x48] ss:$16 sps:$4 sm:$0xff]   ;;  %v2726_v17 = vld [vmem:[#allocation5 + $0x80] ss:$16 sps:$4 sm:$0xff]  }
  0x2d   :  { %v2723_v16 = vld [vmem:[#allocation5 + $0x6c] ss:$16 sps:$4 sm:$0xff]   ;;  %v2729_v18 = vld [vmem:[#allocation5 + $0xa4] ss:$16 sps:$4 sm:$0xff]   ;;  %v2732_v19 = vld [vmem:[#allocation5 + $0x68] ss:$16 sps:$4 sm:$0xff]  }
  0x2e   :  { %240 = vmatpush1.bf16.msra.mxu0 %v2689_v4  ;;  %281 = vmatpush1.bf16.msra.mxu1 %v2708_v11  ;;  %v2735_v20 = vld [vmem:[#allocation5 + $0x8c] ss:$16 sps:$4 sm:$0xff]   ;;  %v2738_v21 = vld [vmem:[#allocation5 + $0xa0] ss:$16 sps:$4 sm:$0xff]   ;;  %v2740_v22 = vld [vmem:[#allocation5 + $0xc4] ss:$16 sps:$4 sm:$0xff]  }
  0x2f   :  { %241 = vmatprep.subr.bf16.mxu0 %v2692_v5  ;;  %282 = vmatprep.subr.bf16.mxu1 %v2716_v14  ;;  %v2744_v23 = vld [vmem:[#allocation5 + $0x88] ss:$16 sps:$4 sm:$0xff]   ;;  %v2747_v24 = vld [vmem:[#allocation5 + $0xac] ss:$16 sps:$4 sm:$0xff]   ;;  %v2750_v25 = vld [vmem:[#allocation5 + $0xc0] ss:$16 sps:$4 sm:$0xff]  }
  0x30   :  { %v2753_v26 = vld [vmem:[#allocation5 + $0xe4] ss:$16 sps:$4 sm:$0xff]   ;;  %v2756_v27 = vld [vmem:[#allocation5 + $0xa8] ss:$16 sps:$4 sm:$0xff]   ;;  %v2759_v28 = vld [vmem:[#allocation5 + $0xcc] ss:$16 sps:$4 sm:$0xff]  }
  0x31   :  { %v2762_v29 = vld [vmem:[#allocation5 + $0xe0] ss:$16 sps:$4 sm:$0xff]   ;;  %v2766_v30 = vld [vmem:[#allocation5 + $0xc8] ss:$16 sps:$4 sm:$0xff]   ;;  %v2769_v31 = vld [vmem:[#allocation5 + $0xec] ss:$16 sps:$4 sm:$0xff]  }
  0x32   :  { %242 = vmatpush1.bf16.msra.mxu0 %v2699_v8  ;;  %283 = vmatpush1.bf16.msra.mxu1 %v2720_v15  ;;  %v2773_v32 = vld [vmem:[#allocation5 + $0xe8] ss:$16 sps:$4 sm:$0xff]   ;;  %v73_v33 = vld [vmem:[#allocation2] sm:$0xff]  ;;  %v75_v43 = vld [vmem:[#allocation2 + $0x10] sm:$0xff]  ;;  %s2639_s1 = smov [#allocation7]  }
  0x33   :  { %243 = vmatprep.subr.bf16.mxu0 %v2703_v9  ;;  %284 = vmatprep.subr.bf16.mxu1 %v2723_v16  ;;  %v76_v49 = vld [vmem:[#allocation2 + $0x18] sm:$0xff]  ;;  %s2094_s8 = sshll.u32 %s2639_s1, 4  ;;  %s2095_s8 = int_to_ptr.vmem [resolvable:$true] %s2094_s8 }
  0x34   :  { %s2604_s9 = scalar_lea.vmem %s2095_s8, 128  ;;  %p2609_p3 = scmp.lt.s32.totalorder %s2095_s8, %s2095_s8 }
  0x35   :  { %p2605_p2 = scmp.ne.s32.totalorder %s2095_s8, %s2604_s9  ;;  %p2610_p4 = scmp.lt.s32.totalorder %s2604_s9, %s2604_s9 }
  0x36   :  { %244 = vmatpush1.bf16.msra.mxu0 %v2712_v12  ;;  %285 = vmatpush1.bf16.msra.mxu1 %v2732_v19 }
  0x37   :  { %245 = vmatprep.subr.bf16.mxu0 %v2714_v13  ;;  %286 = vmatprep.subr.bf16.mxu1 %v2735_v20  ;;  %p2611_p5 = por %p2610_p4, %p2609_p3 }
  0x39   :  { %p2612_p6 = pnand %p2611_p5, %p2605_p2 }
  0x3a   :  { %246 = vmatpush1.bf16.msra.mxu0 %v2726_v17  ;;  %287 = vmatpush1.bf16.msra.mxu1 %v2744_v23 }
  0x3b   :  { %247 = vmatprep.subr.bf16.mxu0 %v2729_v18  ;;  %288 = vmatprep.subr.bf16.mxu1 %v2747_v24 }
  0x3e   :  { %248 = vmatpush1.bf16.msra.mxu0 %v2738_v21  ;;  %289 = vmatpush1.bf16.msra.mxu1 %v2756_v27 }
  0x3f   :  { %249 = vmatprep.subr.bf16.mxu0 %v2740_v22  ;;  %290 = vmatprep.subr.bf16.mxu1 %v2759_v28 }
  0x42   :  { %250 = vmatpush1.bf16.msra.mxu0 %v2750_v25  ;;  %291 = vmatpush1.bf16.msra.mxu1 %v2766_v30 }
  0x43   :  { %251 = vmatprep.subr.bf16.mxu0 %v2753_v26  ;;  %292 = vmatprep.subr.bf16.mxu1 %v2769_v31 }
  0x46   :  { %252 = vmatpush1.bf16.msra.mxu0 %v2762_v29  ;;  %293 = vmatpush1.bf16.msra.mxu1 %v2773_v32 }
  0x47   :  { %353 = vmatprep.subr.bf16.mxu0 %v2681_v1  ;;  %394 = vmatprep.subr.bf16.mxu1 %v2694_v6 }
  0x49   :  { %270 = vmatmul.mubr.bf16.vlgmr.msra.gmra.mrb[0].mxu0 %v2638_v0  ;;  %311 = vmatmul.mubr.bf16.vlgmr.msra.gmra.mrb[0].mxu1 %v2638_v0 }
  0x4a   :  { %354 = vmatpush1.bf16.msra.mxu0 %v2683_v2  ;;  %385 = vmatprep.mubr.bf16.mxu0 %v2638_v0 }
  0x4b   :  { %355 = vmatprep.subr.bf16.mxu0 %v2686_v3  ;;  %395 = vmatpush1.bf16.msra.mxu1 %v2696_v7 }
  0x4c   :  { %396 = vmatprep.subr.bf16.mxu1 %v2706_v10  ;;  %426 = vmatprep.mubr.bf16.mxu1 %v2638_v0 }
  0x4e   :  { %356 = vmatpush1.bf16.msra.mxu0 %v2689_v4 }
  0x4f   :  { %357 = vmatprep.subr.bf16.mxu0 %v2692_v5  ;;  %397 = vmatpush1.bf16.msra.mxu1 %v2708_v11 }
  0x50   :  { %398 = vmatprep.subr.bf16.mxu1 %v2716_v14 }
  0x52   :  { %358 = vmatpush1.bf16.msra.mxu0 %v2699_v8 }
  0x53   :  { %359 = vmatprep.subr.bf16.mxu0 %v2703_v9  ;;  %399 = vmatpush1.bf16.msra.mxu1 %v2720_v15 }
  0x54   :  { %400 = vmatprep.subr.bf16.mxu1 %v2723_v16 }
  0x56   :  { %360 = vmatpush1.bf16.msra.mxu0 %v2712_v12 }
  0x57   :  { %361 = vmatprep.subr.bf16.mxu0 %v2714_v13  ;;  %401 = vmatpush1.bf16.msra.mxu1 %v2732_v19 }
  0x58   :  { %402 = vmatprep.subr.bf16.mxu1 %v2735_v20 }
  0x5a   :  { %362 = vmatpush1.bf16.msra.mxu0 %v2726_v17 }
  0x5b   :  { %363 = vmatprep.subr.bf16.mxu0 %v2729_v18  ;;  %403 = vmatpush1.bf16.msra.mxu1 %v2744_v23 }
  0x5c   :  { %404 = vmatprep.subr.bf16.mxu1 %v2747_v24 }
  0x5e   :  { %364 = vmatpush1.bf16.msra.mxu0 %v2738_v21 }
  0x5f   :  { %365 = vmatprep.subr.bf16.mxu0 %v2740_v22  ;;  %405 = vmatpush1.bf16.msra.mxu1 %v2756_v27 }
  0x60   :  { %406 = vmatprep.subr.bf16.mxu1 %v2759_v28 }
  0x62   :  { %366 = vmatpush1.bf16.msra.mxu0 %v2750_v25 }
  0x63   :  { %367 = vmatprep.subr.bf16.mxu0 %v2753_v26  ;;  %407 = vmatpush1.bf16.msra.mxu1 %v2766_v30 }
  0x64   :  { %408 = vmatprep.subr.bf16.mxu1 %v2769_v31 }
  0x66   :  { %368 = vmatpush1.bf16.msra.mxu0 %v2762_v29 }
  0x67   :  { %469 = vmatprep.subr.bf16.mxu0 %v2681_v1  ;;  %409 = vmatpush1.bf16.msra.mxu1 %v2773_v32 }
  0x68   :  { %510 = vmatprep.subr.bf16.mxu1 %v2694_v6 }
 0x11c   :  { %v271_v35 = vpop.f32.mrb[0].mxu0  ;;  %v312_v44 = vpop.f32.mrb[0].mxu1 }
 0x11d   :  { %v319_v36 = vadd.f32 %v271_v35, %v73_v33  ;;  %v273_v37 = vpop.f32.mrb[1].mxu0  ;;  %v314_v45 = vpop.f32.mrb[1].mxu1  ;;  %v321_v46 = vadd.f32 %v312_v44, %v75_v43 }
 0x11e   :  { %v320_v38 = vadd.f32 %v273_v37, %v74_v34  ;;  %v275_v39 = vpop.f32.mrb[2].mxu0  ;;  %v316_v47 = vpop.f32.mrb[2].mxu1  ;;  %v322_v51 = vadd.f32 %v314_v45, %v76_v49  ;;  %v348_v37 = vld [vmem:[#allocation2 + $0x20] sm:$0xff] }
 0x11f   :  { %v2136_v40 = vmul.f32 -1.442695, %v319_v36  ;;  %v276_v41 = vpop.f32.mrb[3].mxu0  ;;  %v317_v48 = vpop.f32.mrb[3].mxu1  ;;  %v2138_v50 = vmul.f32 -1.442695, %v321_v46 }
 0x120   :  { %v2137_v42 = vmul.f32 -1.442695, %v320_v38  ;;  %v349_v38 = vld [vmem:[#allocation2 + $0x28] sm:$0xff] }
 0x121   :  { %2240 = vpow2.f32 %v2136_v40 }
 0x122   :  { %2242 = vpow2.f32 %v2137_v42 }
 0x123   :  { %2244 = vpow2.f32 %v2138_v50 }
 0x124   :  { %2246 = vtanh.f32 %v322_v51  ;;  %v350_v51 = vld [vmem:[#allocation2 + $0x30] sm:$0xff] }
 0x12b   :  { %v2241_v52 = vpop.eup %2240 }
 0x12c   :  { %v2243_v53 = vpop.eup %2242  ;;  %v332_v54 = vadd.f32 1.0, %v2241_v52 }
 0x12d   :  { %v333_v55 = vadd.f32 1.0, %v2243_v53  ;;  %v2245_v56 = vpop.eup %2244  ;;  %v351_v53 = vld [vmem:[#allocation2 + $0x38] sm:$0xff] }
 0x12e   :  { %2248 = vrcp.f32 %v332_v54  ;;  %v2247_v57 = vpop.eup %2246  ;;  %v334_v59 = vadd.f32 1.0, %v2245_v56 }
 0x12f   :  { %2250 = vrcp.f32 %v333_v55 }
 0x130   :  { %2252 = vrcp.f32 %v334_v59 }
 0x138   :  { %v2249_v58 = vpop.eup %2248 }
 0x139   :  { %v2251_v60 = vpop.eup %2250  ;;  %v343_v61 = vmul.f32 %v2249_v58, %v2247_v57 }
 0x13a   :  { %v342_v62 = vmul.f32 0.0, %v2251_v60  ;;  %v2253_v33 = vpop.eup %2252 }
 0x13c   :  { %v2815_v63 = vadd.f32 %v343_v61, %v342_v62 }
 0x13e   :  { %2254 = vtanh.f32 %v2815_v63 }
 0x148   :  { %v2255_v34 = vpop.eup %2254 }
 0x149   :  { %v346_v35 = vmul.f32 %v2255_v34, %v2253_v33 }
 0x14b   :  { %v352_v36 = vpack.c.bf16 %v346_v35, %v346_v35 }
 0x14d   :  { %386 = vmatmul.mubr.bf16.vlgmr.msra.gmra.mrb[4].mxu0 %v352_v36  ;;  %427 = vmatmul.mubr.bf16.vlgmr.msra.gmra.mrb[4].mxu1 %v352_v36 }
 0x14e   :  { %470 = vmatpush1.bf16.msra.mxu0 %v2683_v2  ;;  %511 = vmatpush1.bf16.msra.mxu1 %v2696_v7 }
 0x14f   :  { %471 = vmatprep.subr.bf16.mxu0 %v2686_v3  ;;  %512 = vmatprep.subr.bf16.mxu1 %v2706_v10 }
 0x150   :  { %501 = vmatprep.mubr.bf16.mxu0 %v2638_v0  ;;  %542 = vmatprep.mubr.bf16.mxu1 %v2638_v0 }
 0x152   :  { %472 = vmatpush1.bf16.msra.mxu0 %v2689_v4  ;;  %513 = vmatpush1.bf16.msra.mxu1 %v2708_v11 }
 0x153   :  { %473 = vmatprep.subr.bf16.mxu0 %v2692_v5  ;;  %514 = vmatprep.subr.bf16.mxu1 %v2716_v14 }
 0x156   :  { %474 = vmatpush1.bf16.msra.mxu0 %v2699_v8  ;;  %515 = vmatpush1.bf16.msra.mxu1 %v2720_v15 }
 0x157   :  { %475 = vmatprep.subr.bf16.mxu0 %v2703_v9  ;;  %516 = vmatprep.subr.bf16.mxu1 %v2723_v16 }
 0x15a   :  { %476 = vmatpush1.bf16.msra.mxu0 %v2712_v12  ;;  %517 = vmatpush1.bf16.msra.mxu1 %v2732_v19 }
 0x15b   :  { %477 = vmatprep.subr.bf16.mxu0 %v2714_v13  ;;  %518 = vmatprep.subr.bf16.mxu1 %v2735_v20 }
 0x15e   :  { %478 = vmatpush1.bf16.msra.mxu0 %v2726_v17  ;;  %519 = vmatpush1.bf16.msra.mxu1 %v2744_v23 }
 0x15f   :  { %479 = vmatprep.subr.bf16.mxu0 %v2729_v18  ;;  %520 = vmatprep.subr.bf16.mxu1 %v2747_v24 }
 0x162   :  { %480 = vmatpush1.bf16.msra.mxu0 %v2738_v21  ;;  %521 = vmatpush1.bf16.msra.mxu1 %v2756_v27 }
 0x163   :  { %481 = vmatprep.subr.bf16.mxu0 %v2740_v22  ;;  %522 = vmatprep.subr.bf16.mxu1 %v2759_v28 }
 0x166   :  { %482 = vmatpush1.bf16.msra.mxu0 %v2750_v25  ;;  %523 = vmatpush1.bf16.msra.mxu1 %v2766_v30 }
 0x167   :  { %483 = vmatprep.subr.bf16.mxu0 %v2753_v26  ;;  %524 = vmatprep.subr.bf16.mxu1 %v2769_v31 }
 0x16a   :  { %484 = vmatpush1.bf16.msra.mxu0 %v2762_v29  ;;  %525 = vmatpush1.bf16.msra.mxu1 %v2773_v32 }
 0x16b   :  { %585 = vmatprep.subr.bf16.mxu0 %v2681_v1  ;;  %626 = vmatprep.subr.bf16.mxu1 %v2694_v6 }
 0x220   :  { %v387_v39 = vpop.f32.mrb[4].mxu0  ;;  %v428_v40 = vpop.f32.mrb[4].mxu1 }
 0x221   :  { %v435_v41 = vadd.f32 %v387_v39, %v348_v37  ;;  %v389_v42 = vpop.f32.mrb[5].mxu0  ;;  %v430_v43 = vpop.f32.mrb[5].mxu1  ;;  %v437_v52 = vadd.f32 %v428_v40, %v350_v51 }
 0x222   :  { %v436_v44 = vadd.f32 %v389_v42, %v349_v38  ;;  %v391_v45 = vpop.f32.mrb[6].mxu0  ;;  %v432_v46 = vpop.f32.mrb[6].mxu1  ;;  %v438_v54 = vadd.f32 %v430_v43, %v351_v53  ;;  %v465_v42 = vld [vmem:[#allocation2 + $0x48] sm:$0xff] }
 0x223   :  { %v2139_v47 = vmul.f32 -1.442695, %v435_v41  ;;  %v392_v48 = vpop.f32.mrb[7].mxu0  ;;  %v433_v49 = vpop.f32.mrb[7].mxu1  ;;  %v2141_v55 = vmul.f32 -1.442695, %v437_v52 }
 0x224   :  { %v2140_v50 = vmul.f32 -1.442695, %v436_v44 }
 0x225   :  { %2256 = vpow2.f32 %v2139_v47 }
 0x226   :  { %2258 = vpow2.f32 %v2140_v50 }
 0x227   :  { %2260 = vtanh.f32 %v438_v54 }
 0x228   :  { %2262 = vpow2.f32 %v2141_v55  ;;  %v466_v55 = vld [vmem:[#allocation2 + $0x50] sm:$0xff] }
 0x22f   :  { %v2257_v56 = vpop.eup %2256 }
 0x230   :  { %v448_v57 = vadd.f32 1.0, %v2257_v56  ;;  %v2259_v58 = vpop.eup %2258 }
 0x231   :  { %v449_v59 = vadd.f32 1.0, %v2259_v58  ;;  %v2261_v60 = vpop.eup %2260 }
 0x232   :  { %2264 = vrcp.f32 %v448_v57  ;;  %v2263_v61 = vpop.eup %2262  ;;  %v467_v57 = vld [vmem:[#allocation2 + $0x58] sm:$0xff] }
 0x233   :  { %2266 = vrcp.f32 %v449_v59  ;;  %v450_v35 = vadd.f32 1.0, %v2263_v61 }
 0x235   :  { %2268 = vrcp.f32 %v450_v35 }
 0x23c   :  { %v2265_v62 = vpop.eup %2264 }
 0x23d   :  { %v459_v33 = vmul.f32 %v2265_v62, %v2261_v60  ;;  %v2267_v34 = vpop.eup %2266 }
 0x23e   :  { %v458_v36 = vmul.f32 %v2267_v34, %v2815_v63  ;;  %v464_v63 = vld [vmem:[#allocation2 + $0x40] sm:$0xff] }
 0x23f   :  { %v2269_v38 = vpop.eup %2268 }
 0x240   :  { %v2853_v37 = vadd.f32 %v459_v33, %v458_v36 }
 0x242   :  { %2270 = vtanh.f32 %v2853_v37 }
 0x24c   :  { %v2271_v39 = vpop.eup %2270 }
 0x24d   :  { %v462_v40 = vmul.f32 %v2271_v39, %v2269_v38 }
 0x24f   :  { %v468_v41 = vpack.c.bf16 %v462_v40, %v462_v40 }
 0x251   :  { %502 = vmatmul.mubr.bf16.vlgmr.msra.gmra.mrb[8].mxu0 %v468_v41  ;;  %543 = vmatmul.mubr.bf16.vlgmr.msra.gmra.mrb[8].mxu1 %v468_v41 }
 0x252   :  { %586 = vmatpush1.bf16.msra.mxu0 %v2683_v2  ;;  %627 = vmatpush1.bf16.msra.mxu1 %v2696_v7 }
 0x253   :  { %587 = vmatprep.subr.bf16.mxu0 %v2686_v3  ;;  %628 = vmatprep.subr.bf16.mxu1 %v2706_v10 }
 0x254   :  { %617 = vmatprep.mubr.bf16.mxu0 %v2638_v0  ;;  %658 = vmatprep.mubr.bf16.mxu1 %v2638_v0 }
 0x256   :  { %588 = vmatpush1.bf16.msra.mxu0 %v2689_v4  ;;  %629 = vmatpush1.bf16.msra.mxu1 %v2708_v11 }
 0x257   :  { %589 = vmatprep.subr.bf16.mxu0 %v2692_v5  ;;  %630 = vmatprep.subr.bf16.mxu1 %v2716_v14 }
 0x25a   :  { %590 = vmatpush1.bf16.msra.mxu0 %v2699_v8  ;;  %631 = vmatpush1.bf16.msra.mxu1 %v2720_v15 }
 0x25b   :  { %591 = vmatprep.subr.bf16.mxu0 %v2703_v9  ;;  %632 = vmatprep.subr.bf16.mxu1 %v2723_v16 }
 0x25e   :  { %592 = vmatpush1.bf16.msra.mxu0 %v2712_v12  ;;  %633 = vmatpush1.bf16.msra.mxu1 %v2732_v19 }
 0x25f   :  { %593 = vmatprep.subr.bf16.mxu0 %v2714_v13  ;;  %634 = vmatprep.subr.bf16.mxu1 %v2735_v20 }
 0x262   :  { %594 = vmatpush1.bf16.msra.mxu0 %v2726_v17  ;;  %635 = vmatpush1.bf16.msra.mxu1 %v2744_v23 }
 0x263   :  { %595 = vmatprep.subr.bf16.mxu0 %v2729_v18  ;;  %636 = vmatprep.subr.bf16.mxu1 %v2747_v24 }
 0x266   :  { %596 = vmatpush1.bf16.msra.mxu0 %v2738_v21  ;;  %637 = vmatpush1.bf16.msra.mxu1 %v2756_v27 }
 0x267   :  { %597 = vmatprep.subr.bf16.mxu0 %v2740_v22  ;;  %638 = vmatprep.subr.bf16.mxu1 %v2759_v28 }
 0x26a   :  { %598 = vmatpush1.bf16.msra.mxu0 %v2750_v25  ;;  %639 = vmatpush1.bf16.msra.mxu1 %v2766_v30 }
 0x26b   :  { %599 = vmatprep.subr.bf16.mxu0 %v2753_v26  ;;  %640 = vmatprep.subr.bf16.mxu1 %v2769_v31 }
 0x26e   :  { %600 = vmatpush1.bf16.msra.mxu0 %v2762_v29  ;;  %641 = vmatpush1.bf16.msra.mxu1 %v2773_v32 }
 0x26f   :  { %701 = vmatprep.subr.bf16.mxu0 %v2681_v1  ;;  %742 = vmatprep.subr.bf16.mxu1 %v2694_v6 }
 0x324   :  { %v503_v43 = vpop.f32.mrb[8].mxu0  ;;  %v544_v44 = vpop.f32.mrb[8].mxu1 }
 0x325   :  { %v551_v45 = vadd.f32 %v503_v43, %v464_v63  ;;  %v505_v46 = vpop.f32.mrb[9].mxu0  ;;  %v546_v47 = vpop.f32.mrb[9].mxu1  ;;  %v553_v56 = vadd.f32 %v544_v44, %v466_v55 }
 0x326   :  { %v552_v48 = vadd.f32 %v505_v46, %v465_v42  ;;  %v507_v49 = vpop.f32.mrb[10].mxu0  ;;  %v548_v50 = vpop.f32.mrb[10].mxu1  ;;  %v554_v58 = vadd.f32 %v546_v47, %v467_v57  ;;  %v581_v46 = vld [vmem:[#allocation2 + $0x68] sm:$0xff] }
 0x327   :  { %v2142_v51 = vmul.f32 -1.442695, %v551_v45  ;;  %v508_v52 = vpop.f32.mrb[11].mxu0  ;;  %v549_v53 = vpop.f32.mrb[11].mxu1  ;;  %v2144_v59 = vmul.f32 -1.442695, %v553_v56 }
 0x328   :  { %v2143_v54 = vmul.f32 -1.442695, %v552_v48 }
 0x329   :  { %2272 = vpow2.f32 %v2142_v51 }
 0x32a   :  { %2274 = vpow2.f32 %v2143_v54 }
 0x32b   :  { %2276 = vtanh.f32 %v554_v58 }
 0x32c   :  { %2278 = vpow2.f32 %v2144_v59  ;;  %v582_v59 = vld [vmem:[#allocation2 + $0x70] sm:$0xff] }
 0x333   :  { %v2273_v60 = vpop.eup %2272 }
 0x334   :  { %v564_v61 = vadd.f32 1.0, %v2273_v60  ;;  %v2275_v62 = vpop.eup %2274 }
 0x335   :  { %v565_v33 = vadd.f32 1.0, %v2275_v62  ;;  %v2277_v34 = vpop.eup %2276 }
 0x336   :  { %2280 = vrcp.f32 %v564_v61  ;;  %v2279_v35 = vpop.eup %2278  ;;  %v583_v61 = vld [vmem:[#allocation2 + $0x78] sm:$0xff] }
 0x337   :  { %2282 = vrcp.f32 %v565_v33  ;;  %v566_v40 = vadd.f32 1.0, %v2279_v35 }
 0x339   :  { %2284 = vrcp.f32 %v566_v40 }
 0x340   :  { %v2281_v36 = vpop.eup %2280 }
 0x341   :  { %v575_v38 = vmul.f32 %v2281_v36, %v2277_v34  ;;  %v2283_v39 = vpop.eup %2282 }
 0x342   :  { %v574_v41 = vmul.f32 %v2283_v39, %v2853_v37  ;;  %v580_v37 = vld [vmem:[#allocation2 + $0x60] sm:$0xff] }
 0x343   :  { %v2285_v42 = vpop.eup %2284 }
 0x344   :  { %v2891_v63 = vadd.f32 %v575_v38, %v574_v41 }
 0x346   :  { %2286 = vtanh.f32 %v2891_v63 }
 0x350   :  { %v2287_v43 = vpop.eup %2286 }
 0x351   :  { %v578_v44 = vmul.f32 %v2287_v43, %v2285_v42 }
 0x353   :  { %v584_v45 = vpack.c.bf16 %v578_v44, %v578_v44 }
 0x355   :  { %618 = vmatmul.mubr.bf16.vlgmr.msra.gmra.mrb[12].mxu0 %v584_v45  ;;  %659 = vmatmul.mubr.bf16.vlgmr.msra.gmra.mrb[12].mxu1 %v584_v45 }
 0x356   :  { %702 = vmatpush1.bf16.msra.mxu0 %v2683_v2  ;;  %743 = vmatpush1.bf16.msra.mxu1 %v2696_v7 }
 0x357   :  { %703 = vmatprep.subr.bf16.mxu0 %v2686_v3  ;;  %744 = vmatprep.subr.bf16.mxu1 %v2706_v10 }
 0x358   :  { %733 = vmatprep.mubr.bf16.mxu0 %v2638_v0  ;;  %774 = vmatprep.mubr.bf16.mxu1 %v2638_v0 }
 0x35a   :  { %704 = vmatpush1.bf16.msra.mxu0 %v2689_v4  ;;  %745 = vmatpush1.bf16.msra.mxu1 %v2708_v11 }
 0x35b   :  { %705 = vmatprep.subr.bf16.mxu0 %v2692_v5  ;;  %746 = vmatprep.subr.bf16.mxu1 %v2716_v14 }
 0x35e   :  { %706 = vmatpush1.bf16.msra.mxu0 %v2699_v8  ;;  %747 = vmatpush1.bf16.msra.mxu1 %v2720_v15 }
 0x35f   :  { %707 = vmatprep.subr.bf16.mxu0 %v2703_v9  ;;  %748 = vmatprep.subr.bf16.mxu1 %v2723_v16 }
 0x362   :  { %708 = vmatpush1.bf16.msra.mxu0 %v2712_v12  ;;  %749 = vmatpush1.bf16.msra.mxu1 %v2732_v19 }
 0x363   :  { %709 = vmatprep.subr.bf16.mxu0 %v2714_v13  ;;  %750 = vmatprep.subr.bf16.mxu1 %v2735_v20 }
 0x366   :  { %710 = vmatpush1.bf16.msra.mxu0 %v2726_v17  ;;  %751 = vmatpush1.bf16.msra.mxu1 %v2744_v23 }
 0x367   :  { %711 = vmatprep.subr.bf16.mxu0 %v2729_v18  ;;  %752 = vmatprep.subr.bf16.mxu1 %v2747_v24 }
 0x36a   :  { %712 = vmatpush1.bf16.msra.mxu0 %v2738_v21  ;;  %753 = vmatpush1.bf16.msra.mxu1 %v2756_v27 }
 0x36b   :  { %713 = vmatprep.subr.bf16.mxu0 %v2740_v22  ;;  %754 = vmatprep.subr.bf16.mxu1 %v2759_v28 }
 0x36e   :  { %714 = vmatpush1.bf16.msra.mxu0 %v2750_v25  ;;  %755 = vmatpush1.bf16.msra.mxu1 %v2766_v30 }
 0x36f   :  { %715 = vmatprep.subr.bf16.mxu0 %v2753_v26  ;;  %756 = vmatprep.subr.bf16.mxu1 %v2769_v31 }
 0x372   :  { %716 = vmatpush1.bf16.msra.mxu0 %v2762_v29  ;;  %757 = vmatpush1.bf16.msra.mxu1 %v2773_v32 }
 0x373   :  { %817 = vmatprep.subr.bf16.mxu0 %v2681_v1  ;;  %858 = vmatprep.subr.bf16.mxu1 %v2694_v6 }
 0x428   :  { %v619_v47 = vpop.f32.mrb[12].mxu0  ;;  %v660_v48 = vpop.f32.mrb[12].mxu1 }
 0x429   :  { %v667_v49 = vadd.f32 %v619_v47, %v580_v37  ;;  %v621_v50 = vpop.f32.mrb[13].mxu0  ;;  %v662_v51 = vpop.f32.mrb[13].mxu1  ;;  %v669_v60 = vadd.f32 %v660_v48, %v582_v59 }
 0x42a   :  { %v668_v52 = vadd.f32 %v621_v50, %v581_v46  ;;  %v623_v53 = vpop.f32.mrb[14].mxu0  ;;  %v664_v54 = vpop.f32.mrb[14].mxu1  ;;  %v670_v62 = vadd.f32 %v662_v51, %v583_v61  ;;  %v697_v50 = vld [vmem:[#allocation2 + $0x88] sm:$0xff] }
 0x42b   :  { %v2145_v55 = vmul.f32 -1.442695, %v667_v49  ;;  %v624_v56 = vpop.f32.mrb[15].mxu0  ;;  %v665_v57 = vpop.f32.mrb[15].mxu1  ;;  %v2147_v33 = vmul.f32 -1.442695, %v669_v60 }
 0x42c   :  { %v2146_v58 = vmul.f32 -1.442695, %v668_v52 }
 0x42d   :  { %2288 = vpow2.f32 %v2145_v55 }
 0x42e   :  { %2290 = vpow2.f32 %v2146_v58 }
 0x42f   :  { %2292 = vtanh.f32 %v670_v62 }
 0x430   :  { %2294 = vpow2.f32 %v2147_v33  ;;  %v698_v33 = vld [vmem:[#allocation2 + $0x90] sm:$0xff] }
 0x437   :  { %v2289_v34 = vpop.eup %2288 }
 0x438   :  { %v680_v35 = vadd.f32 1.0, %v2289_v34  ;;  %v2291_v36 = vpop.eup %2290  ;;  %v699_v34 = vld [vmem:[#allocation2 + $0x98] sm:$0xff] }
 0x439   :  { %v681_v38 = vadd.f32 1.0, %v2291_v36  ;;  %v2293_v39 = vpop.eup %2292 }
 0x43a   :  { %2296 = vrcp.f32 %v680_v35  ;;  %v2295_v40 = vpop.eup %2294 }
 0x43b   :  { %2298 = vrcp.f32 %v681_v38  ;;  %v682_v44 = vadd.f32 1.0, %v2295_v40 }
 0x43d   :  { %2300 = vrcp.f32 %v682_v44 }
 0x444   :  { %v2297_v41 = vpop.eup %2296 }
 0x445   :  { %v691_v42 = vmul.f32 %v2297_v41, %v2293_v39  ;;  %v2299_v43 = vpop.eup %2298 }
 0x446   :  { %v690_v45 = vmul.f32 %v2299_v43, %v2891_v63  ;;  %v696_v63 = vld [vmem:[#allocation2 + $0x80] sm:$0xff] }
 0x447   :  { %v2301_v46 = vpop.eup %2300 }
 0x448   :  { %v2929_v37 = vadd.f32 %v691_v42, %v690_v45 }
 0x44a   :  { %2302 = vtanh.f32 %v2929_v37 }
 0x454   :  { %v2303_v47 = vpop.eup %2302 }
 0x455   :  { %v694_v48 = vmul.f32 %v2303_v47, %v2301_v46 }
 0x457   :  { %v700_v49 = vpack.c.bf16 %v694_v48, %v694_v48 }
 0x459   :  { %734 = vmatmul.mubr.bf16.vlgmr.msra.gmra.mrb[16].mxu0 %v700_v49  ;;  %775 = vmatmul.mubr.bf16.vlgmr.msra.gmra.mrb[16].mxu1 %v700_v49 }
 0x45a   :  { %818 = vmatpush1.bf16.msra.mxu0 %v2683_v2  ;;  %859 = vmatpush1.bf16.msra.mxu1 %v2696_v7 }
 0x45b   :  { %819 = vmatprep.subr.bf16.mxu0 %v2686_v3  ;;  %860 = vmatprep.subr.bf16.mxu1 %v2706_v10 }
 0x45c   :  { %849 = vmatprep.mubr.bf16.mxu0 %v2638_v0  ;;  %890 = vmatprep.mubr.bf16.mxu1 %v2638_v0 }
 0x45e   :  { %820 = vmatpush1.bf16.msra.mxu0 %v2689_v4  ;;  %861 = vmatpush1.bf16.msra.mxu1 %v2708_v11 }
 0x45f   :  { %821 = vmatprep.subr.bf16.mxu0 %v2692_v5  ;;  %862 = vmatprep.subr.bf16.mxu1 %v2716_v14 }
 0x462   :  { %822 = vmatpush1.bf16.msra.mxu0 %v2699_v8  ;;  %863 = vmatpush1.bf16.msra.mxu1 %v2720_v15 }
 0x463   :  { %823 = vmatprep.subr.bf16.mxu0 %v2703_v9  ;;  %864 = vmatprep.subr.bf16.mxu1 %v2723_v16 }
 0x466   :  { %824 = vmatpush1.bf16.msra.mxu0 %v2712_v12  ;;  %865 = vmatpush1.bf16.msra.mxu1 %v2732_v19 }
 0x467   :  { %825 = vmatprep.subr.bf16.mxu0 %v2714_v13  ;;  %866 = vmatprep.subr.bf16.mxu1 %v2735_v20 }
 0x46a   :  { %826 = vmatpush1.bf16.msra.mxu0 %v2726_v17  ;;  %867 = vmatpush1.bf16.msra.mxu1 %v2744_v23 }
 0x46b   :  { %827 = vmatprep.subr.bf16.mxu0 %v2729_v18  ;;  %868 = vmatprep.subr.bf16.mxu1 %v2747_v24 }
 0x46e   :  { %828 = vmatpush1.bf16.msra.mxu0 %v2738_v21  ;;  %869 = vmatpush1.bf16.msra.mxu1 %v2756_v27 }
 0x46f   :  { %829 = vmatprep.subr.bf16.mxu0 %v2740_v22  ;;  %870 = vmatprep.subr.bf16.mxu1 %v2759_v28 }
 0x472   :  { %830 = vmatpush1.bf16.msra.mxu0 %v2750_v25  ;;  %871 = vmatpush1.bf16.msra.mxu1 %v2766_v30 }
 0x473   :  { %831 = vmatprep.subr.bf16.mxu0 %v2753_v26  ;;  %872 = vmatprep.subr.bf16.mxu1 %v2769_v31 }
 0x476   :  { %832 = vmatpush1.bf16.msra.mxu0 %v2762_v29  ;;  %873 = vmatpush1.bf16.msra.mxu1 %v2773_v32 }
 0x477   :  { %933 = vmatprep.subr.bf16.mxu0 %v2681_v1  ;;  %974 = vmatprep.subr.bf16.mxu1 %v2694_v6 }
 0x52c   :  { %v735_v51 = vpop.f32.mrb[16].mxu0  ;;  %v776_v52 = vpop.f32.mrb[16].mxu1 }
 0x52d   :  { %v783_v53 = vadd.f32 %v735_v51, %v696_v63  ;;  %v737_v54 = vpop.f32.mrb[17].mxu0  ;;  %v778_v55 = vpop.f32.mrb[17].mxu1  ;;  %v785_v1 = vadd.f32 %v776_v52, %v698_v33  ;;  %v3030_v33 = vld [vmem:[#allocation5 + $0x44] ss:$16 sps:$4 sm:$0xff]  }
 0x52e   :  { %v784_v56 = vadd.f32 %v737_v54, %v697_v50  ;;  %v739_v57 = vpop.f32.mrb[18].mxu0  ;;  %v780_v58 = vpop.f32.mrb[18].mxu1  ;;  %v786_v35 = vadd.f32 %v778_v55, %v699_v34  ;;  %v3036_v34 = vld [vmem:[#allocation5 + $0x40] ss:$16 sps:$4 sm:$0xff]  }
 0x52f   :  { %v2148_v59 = vmul.f32 -1.442695, %v783_v53  ;;  %v740_v60 = vpop.f32.mrb[19].mxu0  ;;  %v781_v61 = vpop.f32.mrb[19].mxu1  ;;  %v2150_v36 = vmul.f32 -1.442695, %v785_v1 }
 0x530   :  { %v2149_v62 = vmul.f32 -1.442695, %v784_v56  ;;  %v3010_v57 = vld [vmem:[#allocation5] ss:$16 sps:$4 sm:$0xff]   ;;  %v3013_v58 = vld [vmem:[#allocation5 + $0x8] ss:$16 sps:$4 sm:$0xff]  }
 0x531   :  { %2304 = vpow2.f32 %v2148_v59  ;;  %v3016_v59 = vld [vmem:[#allocation5 + $0x24] ss:$16 sps:$4 sm:$0xff]   ;;  %v3019_v60 = vld [vmem:[#allocation5 + $0x2c] ss:$16 sps:$4 sm:$0xff]   ;;  %v3024_v61 = vld [vmem:[#allocation5 + $0x20] ss:$16 sps:$4 sm:$0xff]  }
 0x532   :  { %2306 = vpow2.f32 %v2149_v62  ;;  %v3027_v62 = vld [vmem:[#allocation5 + $0x28] ss:$16 sps:$4 sm:$0xff]   ;;  %v3033_v1 = vld [vmem:[#allocation5 + $0x4c] ss:$16 sps:$4 sm:$0xff]  }
 0x533   :  { %2308 = vtanh.f32 %v786_v35  ;;  %v3039_v35 = vld [vmem:[#allocation5 + $0x48] ss:$16 sps:$4 sm:$0xff]  }
 0x534   :  { %2310 = vpow2.f32 %v2150_v36  ;;  %v3042_v36 = vld [vmem:[#allocation5 + $0x64] ss:$16 sps:$4 sm:$0xff]  }
 0x53b   :  { %v2305_v38 = vpop.eup %2304 }
 0x53c   :  { %v796_v39 = vadd.f32 1.0, %v2305_v38  ;;  %v2307_v40 = vpop.eup %2306  ;;  %v3045_v38 = vld [vmem:[#allocation5 + $0x6c] ss:$16 sps:$4 sm:$0xff]  }
 0x53d   :  { %v797_v41 = vadd.f32 1.0, %v2307_v40  ;;  %v2309_v42 = vpop.eup %2308  ;;  %v3051_v40 = vld [vmem:[#allocation5 + $0x68] ss:$16 sps:$4 sm:$0xff]  }
 0x53e   :  { %2312 = vrcp.f32 %v796_v39  ;;  %v2311_v43 = vpop.eup %2310  ;;  %v3048_v39 = vld [vmem:[#allocation5 + $0x60] ss:$16 sps:$4 sm:$0xff]  }
 0x53f   :  { %2314 = vrcp.f32 %v797_v41  ;;  %v798_v47 = vadd.f32 1.0, %v2311_v43  ;;  %v3054_v41 = vld [vmem:[#allocation5 + $0x84] ss:$16 sps:$4 sm:$0xff]   ;;  %v3060_v43 = vld [vmem:[#allocation5 + $0x80] ss:$16 sps:$4 sm:$0xff]  }
 0x541   :  { %2316 = vrcp.f32 %v798_v47  ;;  %v3072_v47 = vld [vmem:[#allocation5 + $0xa0] ss:$16 sps:$4 sm:$0xff]  }
 0x548   :  { %v2313_v44 = vpop.eup %2312 }
 0x549   :  { %v807_v45 = vmul.f32 %v2313_v44, %v2309_v42  ;;  %v2315_v46 = vpop.eup %2314  ;;  %v3057_v42 = vld [vmem:[#allocation5 + $0x8c] ss:$16 sps:$4 sm:$0xff]   ;;  %v3063_v44 = vld [vmem:[#allocation5 + $0x88] ss:$16 sps:$4 sm:$0xff]  }
 0x54a   :  { %v806_v48 = vmul.f32 %v2315_v46, %v2929_v37  ;;  %v3069_v46 = vld [vmem:[#allocation5 + $0xac] ss:$16 sps:$4 sm:$0xff]  }
 0x54b   :  { %v2317_v63 = vpop.eup %2316 }
 0x54c   :  { %v2967_v49 = vadd.f32 %v807_v45, %v806_v48  ;;  %v3066_v45 = vld [vmem:[#allocation5 + $0xa4] ss:$16 sps:$4 sm:$0xff]   ;;  %v3075_v48 = vld [vmem:[#allocation5 + $0xa8] ss:$16 sps:$4 sm:$0xff]  }
 0x54e   :  { %2318 = vtanh.f32 %v2967_v49 }
 0x558   :  { %v2319_v50 = vpop.eup %2318 }
 0x559   :  { %v810_v51 = vmul.f32 %v2319_v50, %v2317_v63  ;;  %v3081_v63 = vld [vmem:[#allocation5 + $0xcc] ss:$16 sps:$4 sm:$0xff]   ;;  %v3084_v50 = vld [vmem:[#allocation5 + $0xc0] ss:$16 sps:$4 sm:$0xff]  }
 0x55b   :  { %v816_v52 = vpack.c.bf16 %v810_v51, %v810_v51  ;;  %v3087_v51 = vld [vmem:[#allocation5 + $0xc8] ss:$16 sps:$4 sm:$0xff]  }
 0x55d   :  { %850 = vmatmul.mubr.bf16.vlgmr.msra.gmra.mrb[20].mxu0 %v816_v52  ;;  %891 = vmatmul.mubr.bf16.vlgmr.msra.gmra.mrb[20].mxu1 %v816_v52  ;;  %v3090_v52 = vld [vmem:[#allocation5 + $0xe4] ss:$16 sps:$4 sm:$0xff]  }
 0x55e   :  { %934 = vmatpush1.bf16.msra.mxu0 %v2683_v2  ;;  %975 = vmatpush1.bf16.msra.mxu1 %v2696_v7  ;;  %v3002_v2 = vld [vmem:[#allocation5 + $0x4] ss:$16 sps:$4 sm:$0xff]  }
 0x55f   :  { %935 = vmatprep.subr.bf16.mxu0 %v2686_v3  ;;  %976 = vmatprep.subr.bf16.mxu1 %v2706_v10  ;;  %v812_v3 = vld [vmem:[#allocation2 + $0xa0] sm:$0xff] }
 0x560   :  { %965 = vmatprep.mubr.bf16.mxu0 %v2638_v0  ;;  %1006 = vmatprep.mubr.bf16.mxu1 %v2638_v0 }
 0x562   :  { %936 = vmatpush1.bf16.msra.mxu0 %v2689_v4  ;;  %977 = vmatpush1.bf16.msra.mxu1 %v2708_v11  ;;  %v813_v4 = vld [vmem:[#allocation2 + $0xa8] sm:$0xff] }
 0x563   :  { %937 = vmatprep.subr.bf16.mxu0 %v2692_v5  ;;  %978 = vmatprep.subr.bf16.mxu1 %v2716_v14 }
 0x566   :  { %938 = vmatpush1.bf16.msra.mxu0 %v2699_v8  ;;  %979 = vmatpush1.bf16.msra.mxu1 %v2720_v15 }
 0x567   :  { %939 = vmatprep.subr.bf16.mxu0 %v2703_v9  ;;  %980 = vmatprep.subr.bf16.mxu1 %v2723_v16 }
 0x56a   :  { %940 = vmatpush1.bf16.msra.mxu0 %v2712_v12  ;;  %981 = vmatpush1.bf16.msra.mxu1 %v2732_v19 }
 0x56b   :  { %941 = vmatprep.subr.bf16.mxu0 %v2714_v13  ;;  %982 = vmatprep.subr.bf16.mxu1 %v2735_v20  ;;  %v815_v20 = vld [vmem:[#allocation2 + $0xb8] sm:$0xff] }
 0x56e   :  { %942 = vmatpush1.bf16.msra.mxu0 %v2726_v17  ;;  %983 = vmatpush1.bf16.msra.mxu1 %v2744_v23 }
 0x56f   :  { %943 = vmatprep.subr.bf16.mxu0 %v2729_v18  ;;  %984 = vmatprep.subr.bf16.mxu1 %v2747_v24  ;;  %v814_v18 = vld [vmem:[#allocation2 + $0xb0] sm:$0xff] }
 0x572   :  { %944 = vmatpush1.bf16.msra.mxu0 %v2738_v21  ;;  %985 = vmatpush1.bf16.msra.mxu1 %v2756_v27 }
 0x573   :  { %945 = vmatprep.subr.bf16.mxu0 %v2740_v22  ;;  %986 = vmatprep.subr.bf16.mxu1 %v2759_v28 }
 0x576   :  { %946 = vmatpush1.bf16.msra.mxu0 %v2750_v25  ;;  %987 = vmatpush1.bf16.msra.mxu1 %v2766_v30 }
 0x577   :  { %947 = vmatprep.subr.bf16.mxu0 %v2753_v26  ;;  %988 = vmatprep.subr.bf16.mxu1 %v2769_v31 }
 0x57a   :  { %948 = vmatpush1.bf16.msra.mxu0 %v2762_v29  ;;  %989 = vmatpush1.bf16.msra.mxu1 %v2773_v32 }
 0x57b   :  { %1049 = vmatprep.subr.bf16.mxu0 %v3002_v2  ;;  %1090 = vmatprep.subr.bf16.mxu1 %v2694_v6 }
 0x630   :  { %v851_v5 = vpop.f32.mrb[20].mxu0  ;;  %v892_v7 = vpop.f32.mrb[20].mxu1 }
 0x631   :  { %v899_v8 = vadd.f32 %v851_v5, %v812_v3  ;;  %v853_v9 = vpop.f32.mrb[21].mxu0  ;;  %v894_v10 = vpop.f32.mrb[21].mxu1  ;;  %v901_v19 = vadd.f32 %v892_v7, %v814_v18  ;;  %v3093_v3 = vld [vmem:[#allocation5 + $0xec] ss:$16 sps:$4 sm:$0xff]   ;;  %v3099_v5 = vld [vmem:[#allocation5 + $0xe8] ss:$16 sps:$4 sm:$0xff]  }
 0x632   :  { %v900_v11 = vadd.f32 %v853_v9, %v813_v4  ;;  %v855_v12 = vpop.f32.mrb[22].mxu0  ;;  %v896_v13 = vpop.f32.mrb[22].mxu1  ;;  %v902_v6 = vadd.f32 %v894_v10, %v815_v20  ;;  %v3096_v4 = vld [vmem:[#allocation5 + $0xe0] ss:$16 sps:$4 sm:$0xff]   ;;  %v3103_v7 = vld [vmem:[#allocation5 + $0xc] ss:$16 sps:$4 sm:$0xff]  }
 0x633   :  { %v2151_v14 = vmul.f32 -1.442695, %v899_v8  ;;  %v856_v15 = vpop.f32.mrb[23].mxu0  ;;  %v897_v16 = vpop.f32.mrb[23].mxu1  ;;  %v2153_v21 = vmul.f32 -1.442695, %v901_v19 }
 0x634   :  { %v2152_v17 = vmul.f32 -1.442695, %v900_v11  ;;  %v928_v8 = vld [vmem:[#allocation2 + $0xc0] sm:$0xff]  ;;  %v929_v9 = vld [vmem:[#allocation2 + $0xc8] sm:$0xff] }
 0x635   :  { %2320 = vpow2.f32 %v2151_v14 }
 0x636   :  { %2322 = vpow2.f32 %v2152_v17 }
 0x637   :  { %2324 = vtanh.f32 %v902_v6 }
 0x638   :  { %2326 = vpow2.f32 %v2153_v21  ;;  %v930_v21 = vld [vmem:[#allocation2 + $0xd0] sm:$0xff] }
 0x63f   :  { %v2321_v22 = vpop.eup %2320 }
 0x640   :  { %v912_v23 = vadd.f32 1.0, %v2321_v22  ;;  %v2323_v24 = vpop.eup %2322 }
 0x641   :  { %v913_v25 = vadd.f32 1.0, %v2323_v24  ;;  %v2325_v26 = vpop.eup %2324 }
 0x642   :  { %2328 = vrcp.f32 %v912_v23  ;;  %v2327_v27 = vpop.eup %2326  ;;  %v931_v23 = vld [vmem:[#allocation2 + $0xd8] sm:$0xff] }
 0x643   :  { %2330 = vrcp.f32 %v913_v25  ;;  %v914_v31 = vadd.f32 1.0, %v2327_v27 }
 0x645   :  { %2332 = vrcp.f32 %v914_v31 }
 0x64c   :  { %v2329_v28 = vpop.eup %2328 }
 0x64d   :  { %v923_v29 = vmul.f32 %v2329_v28, %v2325_v26  ;;  %v2331_v30 = vpop.eup %2330 }
 0x64e   :  { %v922_v32 = vmul.f32 %v2331_v30, %v2967_v49  ;;  %v3078_v49 = vld [vmem:[#allocation5 + $0xc4] ss:$16 sps:$4 sm:$0xff]  }
 0x64f   :  { %v2333_v53 = vpop.eup %2332 }
 0x650   :  { %v3007_v37 = vadd.f32 %v923_v29, %v922_v32 }
 0x652   :  { %2334 = vtanh.f32 %v3007_v37 }
 0x65c   :  { %v2335_v54 = vpop.eup %2334 }
 0x65d   :  { %v926_v55 = vmul.f32 %v2335_v54, %v2333_v53 }
 0x65f   :  { %v932_v56 = vpack.c.bf16 %v926_v55, %v926_v55 }
 0x661   :  { %966 = vmatmul.mubr.bf16.vlgmr.msra.gmra.mrb[24].mxu0 %v932_v56  ;;  %1007 = vmatmul.mubr.bf16.vlgmr.msra.gmra.mrb[24].mxu1 %v932_v56 }
 0x662   :  { %1050 = vmatpush1.bf16.msra.mxu0 %v3010_v57  ;;  %1091 = vmatpush1.bf16.msra.mxu1 %v3013_v58 }
 0x663   :  { %1051 = vmatprep.subr.bf16.mxu0 %v3016_v59  ;;  %1092 = vmatprep.subr.bf16.mxu1 %v3019_v60 }
 0x664   :  { %1081 = vmatprep.mubr.bf16.mxu0 %v2638_v0  ;;  %1122 = vmatprep.mubr.bf16.mxu1 %v2638_v0 }
 0x666   :  { %1052 = vmatpush1.bf16.msra.mxu0 %v3024_v61  ;;  %1093 = vmatpush1.bf16.msra.mxu1 %v3027_v62 }
 0x667   :  { %1053 = vmatprep.subr.bf16.mxu0 %v3030_v33  ;;  %1094 = vmatprep.subr.bf16.mxu1 %v3033_v1 }
 0x66a   :  { %1054 = vmatpush1.bf16.msra.mxu0 %v3036_v34  ;;  %1095 = vmatpush1.bf16.msra.mxu1 %v3039_v35 }
 0x66b   :  { %1055 = vmatprep.subr.bf16.mxu0 %v3042_v36  ;;  %1096 = vmatprep.subr.bf16.mxu1 %v3045_v38 }
 0x66e   :  { %1056 = vmatpush1.bf16.msra.mxu0 %v3048_v39  ;;  %1097 = vmatpush1.bf16.msra.mxu1 %v3051_v40 }
 0x66f   :  { %1057 = vmatprep.subr.bf16.mxu0 %v3054_v41  ;;  %1098 = vmatprep.subr.bf16.mxu1 %v3057_v42 }
 0x672   :  { %1058 = vmatpush1.bf16.msra.mxu0 %v3060_v43  ;;  %1099 = vmatpush1.bf16.msra.mxu1 %v3063_v44 }
 0x673   :  { %1059 = vmatprep.subr.bf16.mxu0 %v3066_v45  ;;  %1100 = vmatprep.subr.bf16.mxu1 %v3069_v46 }
 0x676   :  { %1060 = vmatpush1.bf16.msra.mxu0 %v3072_v47  ;;  %1101 = vmatpush1.bf16.msra.mxu1 %v3075_v48 }
 0x677   :  { %1061 = vmatprep.subr.bf16.mxu0 %v3078_v49  ;;  %1102 = vmatprep.subr.bf16.mxu1 %v3081_v63 }
 0x67a   :  { %1062 = vmatpush1.bf16.msra.mxu0 %v3084_v50  ;;  %1103 = vmatpush1.bf16.msra.mxu1 %v3087_v51 }
 0x67b   :  { %1063 = vmatprep.subr.bf16.mxu0 %v3090_v52  ;;  %1104 = vmatprep.subr.bf16.mxu1 %v3093_v3 }
 0x67e   :  { %1064 = vmatpush1.bf16.msra.mxu0 %v3096_v4  ;;  %1105 = vmatpush1.bf16.msra.mxu1 %v3099_v5 }
 0x67f   :  { %1165 = vmatprep.subr.bf16.mxu0 %v3002_v2  ;;  %1206 = vmatprep.subr.bf16.mxu1 %v3103_v7 }
 0x734   :  { %v967_v10 = vpop.f32.mrb[24].mxu0  ;;  %v1008_v11 = vpop.f32.mrb[24].mxu1 }
 0x735   :  { %v1015_v12 = vadd.f32 %v967_v10, %v928_v8  ;;  %v969_v13 = vpop.f32.mrb[25].mxu0  ;;  %v1010_v14 = vpop.f32.mrb[25].mxu1  ;;  %v1017_v22 = vadd.f32 %v1008_v11, %v930_v21 }
 0x736   :  { %v1016_v15 = vadd.f32 %v969_v13, %v929_v9  ;;  %v971_v16 = vpop.f32.mrb[26].mxu0  ;;  %v1012_v17 = vpop.f32.mrb[26].mxu1  ;;  %v1018_v24 = vadd.f32 %v1010_v14, %v931_v23  ;;  %v1045_v13 = vld [vmem:[#allocation2 + $0xe8] sm:$0xff] }
 0x737   :  { %v2154_v18 = vmul.f32 -1.442695, %v1015_v12  ;;  %v972_v19 = vpop.f32.mrb[27].mxu0  ;;  %v1013_v20 = vpop.f32.mrb[27].mxu1  ;;  %v2156_v25 = vmul.f32 -1.442695, %v1017_v22 }
 0x738   :  { %v2155_v6 = vmul.f32 -1.442695, %v1016_v15 }
 0x739   :  { %2336 = vpow2.f32 %v2154_v18 }
 0x73a   :  { %2338 = vpow2.f32 %v2155_v6 }
 0x73b   :  { %2340 = vtanh.f32 %v1018_v24 }
 0x73c   :  { %2342 = vpow2.f32 %v2156_v25  ;;  %v1046_v25 = vld [vmem:[#allocation2 + $0xf0] sm:$0xff] }
 0x743   :  { %v2337_v26 = vpop.eup %2336 }
 0x744   :  { %v1028_v27 = vadd.f32 1.0, %v2337_v26  ;;  %v2339_v28 = vpop.eup %2338 }
 0x745   :  { %v1029_v29 = vadd.f32 1.0, %v2339_v28  ;;  %v2341_v30 = vpop.eup %2340 }
 0x746   :  { %2344 = vrcp.f32 %v1028_v27  ;;  %v2343_v31 = vpop.eup %2342  ;;  %v1047_v27 = vld [vmem:[#allocation2 + $0xf8] sm:$0xff] }
 0x747   :  { %2346 = vrcp.f32 %v1029_v29  ;;  %v1030_v55 = vadd.f32 1.0, %v2343_v31 }
 0x749   :  { %2348 = vrcp.f32 %v1030_v55 }
 0x750   :  { %v2345_v32 = vpop.eup %2344 }
 0x751   :  { %v1039_v53 = vmul.f32 %v2345_v32, %v2341_v30  ;;  %v2347_v54 = vpop.eup %2346 }
 0x752   :  { %v1038_v56 = vmul.f32 %v2347_v54, %v3007_v37  ;;  %v1044_v37 = vld [vmem:[#allocation2 + $0xe0] sm:$0xff] }
 0x753   :  { %v2349_v9 = vpop.eup %2348 }
 0x754   :  { %v3107_v8 = vadd.f32 %v1039_v53, %v1038_v56 }
 0x756   :  { %2350 = vtanh.f32 %v3107_v8 }
 0x760   :  { %v2351_v10 = vpop.eup %2350 }
 0x761   :  { %v1042_v11 = vmul.f32 %v2351_v10, %v2349_v9 }
 0x763   :  { %v1048_v12 = vpack.c.bf16 %v1042_v11, %v1042_v11 }
 0x765   :  { %1082 = vmatmul.mubr.bf16.vlgmr.msra.gmra.mrb[28].mxu0 %v1048_v12  ;;  %1123 = vmatmul.mubr.bf16.vlgmr.msra.gmra.mrb[28].mxu1 %v1048_v12 }
 0x766   :  { %1166 = vmatpush1.bf16.msra.mxu0 %v3010_v57  ;;  %1207 = vmatpush1.bf16.msra.mxu1 %v3013_v58 }
 0x767   :  { %1167 = vmatprep.subr.bf16.mxu0 %v3016_v59  ;;  %1208 = vmatprep.subr.bf16.mxu1 %v3019_v60 }
 0x768   :  { %1197 = vmatprep.mubr.bf16.mxu0 %v2638_v0  ;;  %1238 = vmatprep.mubr.bf16.mxu1 %v2638_v0 }
 0x76a   :  { %1168 = vmatpush1.bf16.msra.mxu0 %v3024_v61  ;;  %1209 = vmatpush1.bf16.msra.mxu1 %v3027_v62 }
 0x76b   :  { %1169 = vmatprep.subr.bf16.mxu0 %v3030_v33  ;;  %1210 = vmatprep.subr.bf16.mxu1 %v3033_v1 }
 0x76e   :  { %1170 = vmatpush1.bf16.msra.mxu0 %v3036_v34  ;;  %1211 = vmatpush1.bf16.msra.mxu1 %v3039_v35 }
 0x76f   :  { %1171 = vmatprep.subr.bf16.mxu0 %v3042_v36  ;;  %1212 = vmatprep.subr.bf16.mxu1 %v3045_v38 }
 0x772   :  { %1172 = vmatpush1.bf16.msra.mxu0 %v3048_v39  ;;  %1213 = vmatpush1.bf16.msra.mxu1 %v3051_v40 }
 0x773   :  { %1173 = vmatprep.subr.bf16.mxu0 %v3054_v41  ;;  %1214 = vmatprep.subr.bf16.mxu1 %v3057_v42 }
 0x776   :  { %1174 = vmatpush1.bf16.msra.mxu0 %v3060_v43  ;;  %1215 = vmatpush1.bf16.msra.mxu1 %v3063_v44 }
 0x777   :  { %1175 = vmatprep.subr.bf16.mxu0 %v3066_v45  ;;  %1216 = vmatprep.subr.bf16.mxu1 %v3069_v46 }
 0x77a   :  { %1176 = vmatpush1.bf16.msra.mxu0 %v3072_v47  ;;  %1217 = vmatpush1.bf16.msra.mxu1 %v3075_v48 }
 0x77b   :  { %1177 = vmatprep.subr.bf16.mxu0 %v3078_v49  ;;  %1218 = vmatprep.subr.bf16.mxu1 %v3081_v63 }
 0x77e   :  { %1178 = vmatpush1.bf16.msra.mxu0 %v3084_v50  ;;  %1219 = vmatpush1.bf16.msra.mxu1 %v3087_v51 }
 0x77f   :  { %1179 = vmatprep.subr.bf16.mxu0 %v3090_v52  ;;  %1220 = vmatprep.subr.bf16.mxu1 %v3093_v3 }
 0x782   :  { %1180 = vmatpush1.bf16.msra.mxu0 %v3096_v4  ;;  %1221 = vmatpush1.bf16.msra.mxu1 %v3099_v5 }
 0x783   :  { %1281 = vmatprep.subr.bf16.mxu0 %v3002_v2  ;;  %1322 = vmatprep.subr.bf16.mxu1 %v3103_v7 }
 0x838   :  { %v1083_v14 = vpop.f32.mrb[28].mxu0  ;;  %v1124_v15 = vpop.f32.mrb[28].mxu1 }
 0x839   :  { %v1131_v16 = vadd.f32 %v1083_v14, %v1044_v37  ;;  %v1085_v17 = vpop.f32.mrb[29].mxu0  ;;  %v1126_v18 = vpop.f32.mrb[29].mxu1  ;;  %v1133_v26 = vadd.f32 %v1124_v15, %v1046_v25 }
 0x83a   :  { %v1132_v19 = vadd.f32 %v1085_v17, %v1045_v13  ;;  %v1087_v20 = vpop.f32.mrb[30].mxu0  ;;  %v1128_v6 = vpop.f32.mrb[30].mxu1  ;;  %v1134_v28 = vadd.f32 %v1126_v18, %v1047_v27  ;;  %v1161_v17 = vld [vmem:[#allocation2 + $0x108] sm:$0xff] }
 0x83b   :  { %v2157_v21 = vmul.f32 -1.442695, %v1131_v16  ;;  %v1088_v22 = vpop.f32.mrb[31].mxu0  ;;  %v1129_v23 = vpop.f32.mrb[31].mxu1  ;;  %v2159_v29 = vmul.f32 -1.442695, %v1133_v26 }
 0x83c   :  { %v2158_v24 = vmul.f32 -1.442695, %v1132_v19 }
 0x83d   :  { %2352 = vpow2.f32 %v2157_v21 }
 0x83e   :  { %2354 = vpow2.f32 %v2158_v24 }
 0x83f   :  { %2356 = vtanh.f32 %v1134_v28 }
 0x840   :  { %2358 = vpow2.f32 %v2159_v29  ;;  %v1162_v29 = vld [vmem:[#allocation2 + $0x110] sm:$0xff] }
 0x847   :  { %v2353_v30 = vpop.eup %2352 }
 0x848   :  { %v1144_v31 = vadd.f32 1.0, %v2353_v30  ;;  %v2355_v32 = vpop.eup %2354 }
 0x849   :  { %v1145_v53 = vadd.f32 1.0, %v2355_v32  ;;  %v2357_v54 = vpop.eup %2356 }
 0x84a   :  { %2360 = vrcp.f32 %v1144_v31  ;;  %v2359_v55 = vpop.eup %2358  ;;  %v1163_v31 = vld [vmem:[#allocation2 + $0x118] sm:$0xff] }
 0x84b   :  { %2362 = vrcp.f32 %v1145_v53  ;;  %v1146_v11 = vadd.f32 1.0, %v2359_v55 }
 0x84d   :  { %2364 = vrcp.f32 %v1146_v11 }
 0x854   :  { %v2361_v56 = vpop.eup %2360 }
 0x855   :  { %v1155_v9 = vmul.f32 %v2361_v56, %v2357_v54  ;;  %v2363_v10 = vpop.eup %2362 }
 0x856   :  { %v1154_v12 = vmul.f32 %v2363_v10, %v3107_v8  ;;  %v1160_v8 = vld [vmem:[#allocation2 + $0x100] sm:$0xff] }
 0x857   :  { %v2365_v13 = vpop.eup %2364 }
 0x858   :  { %v3145_v37 = vadd.f32 %v1155_v9, %v1154_v12 }
 0x85a   :  { %2366 = vtanh.f32 %v3145_v37 }
 0x864   :  { %v2367_v14 = vpop.eup %2366 }
 0x865   :  { %v1158_v15 = vmul.f32 %v2367_v14, %v2365_v13 }
 0x867   :  { %v1164_v16 = vpack.c.bf16 %v1158_v15, %v1158_v15 }
 0x869   :  { %1198 = vmatmul.mubr.bf16.vlgmr.msra.gmra.mrb[32].mxu0 %v1164_v16  ;;  %1239 = vmatmul.mubr.bf16.vlgmr.msra.gmra.mrb[32].mxu1 %v1164_v16 }
 0x86a   :  { %1282 = vmatpush1.bf16.msra.mxu0 %v3010_v57  ;;  %1323 = vmatpush1.bf16.msra.mxu1 %v3013_v58 }
 0x86b   :  { %1283 = vmatprep.subr.bf16.mxu0 %v3016_v59  ;;  %1324 = vmatprep.subr.bf16.mxu1 %v3019_v60 }
 0x86c   :  { %1313 = vmatprep.mubr.bf16.mxu0 %v2638_v0  ;;  %1354 = vmatprep.mubr.bf16.mxu1 %v2638_v0 }
 0x86e   :  { %1284 = vmatpush1.bf16.msra.mxu0 %v3024_v61  ;;  %1325 = vmatpush1.bf16.msra.mxu1 %v3027_v62 }
 0x86f   :  { %1285 = vmatprep.subr.bf16.mxu0 %v3030_v33  ;;  %1326 = vmatprep.subr.bf16.mxu1 %v3033_v1 }
 0x872   :  { %1286 = vmatpush1.bf16.msra.mxu0 %v3036_v34  ;;  %1327 = vmatpush1.bf16.msra.mxu1 %v3039_v35 }
 0x873   :  { %1287 = vmatprep.subr.bf16.mxu0 %v3042_v36  ;;  %1328 = vmatprep.subr.bf16.mxu1 %v3045_v38 }
 0x876   :  { %1288 = vmatpush1.bf16.msra.mxu0 %v3048_v39  ;;  %1329 = vmatpush1.bf16.msra.mxu1 %v3051_v40 }
 0x877   :  { %1289 = vmatprep.subr.bf16.mxu0 %v3054_v41  ;;  %1330 = vmatprep.subr.bf16.mxu1 %v3057_v42 }
 0x87a   :  { %1290 = vmatpush1.bf16.msra.mxu0 %v3060_v43  ;;  %1331 = vmatpush1.bf16.msra.mxu1 %v3063_v44 }
 0x87b   :  { %1291 = vmatprep.subr.bf16.mxu0 %v3066_v45  ;;  %1332 = vmatprep.subr.bf16.mxu1 %v3069_v46 }
 0x87e   :  { %1292 = vmatpush1.bf16.msra.mxu0 %v3072_v47  ;;  %1333 = vmatpush1.bf16.msra.mxu1 %v3075_v48 }
 0x87f   :  { %1293 = vmatprep.subr.bf16.mxu0 %v3078_v49  ;;  %1334 = vmatprep.subr.bf16.mxu1 %v3081_v63 }
 0x882   :  { %1294 = vmatpush1.bf16.msra.mxu0 %v3084_v50  ;;  %1335 = vmatpush1.bf16.msra.mxu1 %v3087_v51 }
 0x883   :  { %1295 = vmatprep.subr.bf16.mxu0 %v3090_v52  ;;  %1336 = vmatprep.subr.bf16.mxu1 %v3093_v3 }
 0x886   :  { %1296 = vmatpush1.bf16.msra.mxu0 %v3096_v4  ;;  %1337 = vmatpush1.bf16.msra.mxu1 %v3099_v5 }
 0x887   :  { %1397 = vmatprep.subr.bf16.mxu0 %v3002_v2  ;;  %1438 = vmatprep.subr.bf16.mxu1 %v3103_v7 }
 0x93c   :  { %v1199_v18 = vpop.f32.mrb[32].mxu0  ;;  %v1240_v19 = vpop.f32.mrb[32].mxu1 }
 0x93d   :  { %v1247_v20 = vadd.f32 %v1199_v18, %v1160_v8  ;;  %v1201_v6 = vpop.f32.mrb[33].mxu0  ;;  %v1242_v21 = vpop.f32.mrb[33].mxu1  ;;  %v1249_v30 = vadd.f32 %v1240_v19, %v1162_v29 }
 0x93e   :  { %v1248_v22 = vadd.f32 %v1201_v6, %v1161_v17  ;;  %v1203_v23 = vpop.f32.mrb[34].mxu0  ;;  %v1244_v24 = vpop.f32.mrb[34].mxu1  ;;  %v1250_v32 = vadd.f32 %v1242_v21, %v1163_v31  ;;  %v1277_v6 = vld [vmem:[#allocation2 + $0x128] sm:$0xff] }
 0x93f   :  { %v2160_v25 = vmul.f32 -1.442695, %v1247_v20  ;;  %v1204_v26 = vpop.f32.mrb[35].mxu0  ;;  %v1245_v27 = vpop.f32.mrb[35].mxu1  ;;  %v2162_v53 = vmul.f32 -1.442695, %v1249_v30 }
 0x940   :  { %v2161_v28 = vmul.f32 -1.442695, %v1248_v22 }
 0x941   :  { %2368 = vpow2.f32 %v2160_v25 }
 0x942   :  { %2370 = vpow2.f32 %v2161_v28 }
 0x943   :  { %2372 = vtanh.f32 %v1250_v32 }
 0x944   :  { %2374 = vpow2.f32 %v2162_v53  ;;  %v1278_v53 = vld [vmem:[#allocation2 + $0x130] sm:$0xff] }
 0x94b   :  { %v2369_v54 = vpop.eup %2368 }
 0x94c   :  { %v1260_v55 = vadd.f32 1.0, %v2369_v54  ;;  %v2371_v56 = vpop.eup %2370 }
 0x94d   :  { %v1261_v9 = vadd.f32 1.0, %v2371_v56  ;;  %v2373_v10 = vpop.eup %2372 }
 0x94e   :  { %2376 = vrcp.f32 %v1260_v55  ;;  %v2375_v11 = vpop.eup %2374  ;;  %v1279_v55 = vld [vmem:[#allocation2 + $0x138] sm:$0xff] }
 0x94f   :  { %2378 = vrcp.f32 %v1261_v9  ;;  %v1262_v15 = vadd.f32 1.0, %v2375_v11 }
 0x951   :  { %2380 = vrcp.f32 %v1262_v15 }
 0x958   :  { %v2377_v12 = vpop.eup %2376 }
 0x959   :  { %v1271_v13 = vmul.f32 %v2377_v12, %v2373_v10  ;;  %v2379_v14 = vpop.eup %2378 }
 0x95a   :  { %v1270_v16 = vmul.f32 %v2379_v14, %v3145_v37  ;;  %v1276_v37 = vld [vmem:[#allocation2 + $0x120] sm:$0xff] }
 0x95b   :  { %v2381_v17 = vpop.eup %2380 }
 0x95c   :  { %v3183_v8 = vadd.f32 %v1271_v13, %v1270_v16 }
 0x95e   :  { %2382 = vtanh.f32 %v3183_v8 }
 0x968   :  { %v2383_v18 = vpop.eup %2382 }
 0x969   :  { %v1274_v19 = vmul.f32 %v2383_v18, %v2381_v17 }
 0x96b   :  { %v1280_v20 = vpack.c.bf16 %v1274_v19, %v1274_v19 }
 0x96d   :  { %1314 = vmatmul.mubr.bf16.vlgmr.msra.gmra.mrb[36].mxu0 %v1280_v20  ;;  %1355 = vmatmul.mubr.bf16.vlgmr.msra.gmra.mrb[36].mxu1 %v1280_v20 }
 0x96e   :  { %1398 = vmatpush1.bf16.msra.mxu0 %v3010_v57  ;;  %1439 = vmatpush1.bf16.msra.mxu1 %v3013_v58 }
 0x96f   :  { %1399 = vmatprep.subr.bf16.mxu0 %v3016_v59  ;;  %1440 = vmatprep.subr.bf16.mxu1 %v3019_v60 }
 0x970   :  { %1429 = vmatprep.mubr.bf16.mxu0 %v2638_v0  ;;  %1470 = vmatprep.mubr.bf16.mxu1 %v2638_v0 }
 0x972   :  { %1400 = vmatpush1.bf16.msra.mxu0 %v3024_v61  ;;  %1441 = vmatpush1.bf16.msra.mxu1 %v3027_v62 }
 0x973   :  { %1401 = vmatprep.subr.bf16.mxu0 %v3030_v33  ;;  %1442 = vmatprep.subr.bf16.mxu1 %v3033_v1 }
 0x976   :  { %1402 = vmatpush1.bf16.msra.mxu0 %v3036_v34  ;;  %1443 = vmatpush1.bf16.msra.mxu1 %v3039_v35 }
 0x977   :  { %1403 = vmatprep.subr.bf16.mxu0 %v3042_v36  ;;  %1444 = vmatprep.subr.bf16.mxu1 %v3045_v38 }
 0x97a   :  { %1404 = vmatpush1.bf16.msra.mxu0 %v3048_v39  ;;  %1445 = vmatpush1.bf16.msra.mxu1 %v3051_v40 }
 0x97b   :  { %1405 = vmatprep.subr.bf16.mxu0 %v3054_v41  ;;  %1446 = vmatprep.subr.bf16.mxu1 %v3057_v42 }
 0x97e   :  { %1406 = vmatpush1.bf16.msra.mxu0 %v3060_v43  ;;  %1447 = vmatpush1.bf16.msra.mxu1 %v3063_v44 }
 0x97f   :  { %1407 = vmatprep.subr.bf16.mxu0 %v3066_v45  ;;  %1448 = vmatprep.subr.bf16.mxu1 %v3069_v46 }
 0x982   :  { %1408 = vmatpush1.bf16.msra.mxu0 %v3072_v47  ;;  %1449 = vmatpush1.bf16.msra.mxu1 %v3075_v48 }
 0x983   :  { %1409 = vmatprep.subr.bf16.mxu0 %v3078_v49  ;;  %1450 = vmatprep.subr.bf16.mxu1 %v3081_v63 }
 0x986   :  { %1410 = vmatpush1.bf16.msra.mxu0 %v3084_v50  ;;  %1451 = vmatpush1.bf16.msra.mxu1 %v3087_v51 }
 0x987   :  { %1411 = vmatprep.subr.bf16.mxu0 %v3090_v52  ;;  %1452 = vmatprep.subr.bf16.mxu1 %v3093_v3 }
 0x98a   :  { %1412 = vmatpush1.bf16.msra.mxu0 %v3096_v4  ;;  %1453 = vmatpush1.bf16.msra.mxu1 %v3099_v5 }
 0x98b   :  { %1513 = vmatprep.subr.bf16.mxu0 %v3002_v2  ;;  %1554 = vmatprep.subr.bf16.mxu1 %v3103_v7 }
 0xa40   :  { %v1315_v21 = vpop.f32.mrb[36].mxu0  ;;  %v1356_v22 = vpop.f32.mrb[36].mxu1 }
 0xa41   :  { %v1363_v23 = vadd.f32 %v1315_v21, %v1276_v37  ;;  %v1317_v24 = vpop.f32.mrb[37].mxu0  ;;  %v1358_v25 = vpop.f32.mrb[37].mxu1  ;;  %v1365_v54 = vadd.f32 %v1356_v22, %v1278_v53 }
 0xa42   :  { %v1364_v26 = vadd.f32 %v1317_v24, %v1277_v6  ;;  %v1319_v27 = vpop.f32.mrb[38].mxu0  ;;  %v1360_v28 = vpop.f32.mrb[38].mxu1  ;;  %v1366_v56 = vadd.f32 %v1358_v25, %v1279_v55  ;;  %v1393_v24 = vld [vmem:[#allocation2 + $0x148] sm:$0xff] }
 0xa43   :  { %v2163_v29 = vmul.f32 -1.442695, %v1363_v23  ;;  %v1320_v30 = vpop.f32.mrb[39].mxu0  ;;  %v1361_v31 = vpop.f32.mrb[39].mxu1  ;;  %v2165_v9 = vmul.f32 -1.442695, %v1365_v54 }
 0xa44   :  { %v2164_v32 = vmul.f32 -1.442695, %v1364_v26 }
 0xa45   :  { %2384 = vpow2.f32 %v2163_v29 }
 0xa46   :  { %2386 = vpow2.f32 %v2164_v32 }
 0xa47   :  { %2388 = vtanh.f32 %v1366_v56 }
 0xa48   :  { %2390 = vpow2.f32 %v2165_v9  ;;  %v1394_v9 = vld [vmem:[#allocation2 + $0x150] sm:$0xff] }
 0xa4f   :  { %v2385_v10 = vpop.eup %2384 }
 0xa50   :  { %v1376_v11 = vadd.f32 1.0, %v2385_v10  ;;  %v2387_v12 = vpop.eup %2386 }
 0xa51   :  { %v1377_v13 = vadd.f32 1.0, %v2387_v12  ;;  %v2389_v14 = vpop.eup %2388 }
 0xa52   :  { %2392 = vrcp.f32 %v1376_v11  ;;  %v2391_v15 = vpop.eup %2390  ;;  %v1395_v11 = vld [vmem:[#allocation2 + $0x158] sm:$0xff] }
 0xa53   :  { %2394 = vrcp.f32 %v1377_v13  ;;  %v1378_v19 = vadd.f32 1.0, %v2391_v15 }
 0xa55   :  { %2396 = vrcp.f32 %v1378_v19 }
 0xa5c   :  { %v2393_v16 = vpop.eup %2392 }
 0xa5d   :  { %v1387_v17 = vmul.f32 %v2393_v16, %v2389_v14  ;;  %v2395_v18 = vpop.eup %2394 }
 0xa5e   :  { %v1386_v20 = vmul.f32 %v2395_v18, %v3183_v8  ;;  %v1392_v8 = vld [vmem:[#allocation2 + $0x140] sm:$0xff] }
 0xa5f   :  { %v2397_v6 = vpop.eup %2396 }
 0xa60   :  { %v3221_v37 = vadd.f32 %v1387_v17, %v1386_v20 }
 0xa62   :  { %2398 = vtanh.f32 %v3221_v37 }
 0xa6c   :  { %v2399_v21 = vpop.eup %2398 }
 0xa6d   :  { %v1390_v22 = vmul.f32 %v2399_v21, %v2397_v6 }
 0xa6f   :  { %v1396_v23 = vpack.c.bf16 %v1390_v22, %v1390_v22 }
 0xa71   :  { %1430 = vmatmul.mubr.bf16.vlgmr.msra.gmra.mrb[40].mxu0 %v1396_v23  ;;  %1471 = vmatmul.mubr.bf16.vlgmr.msra.gmra.mrb[40].mxu1 %v1396_v23 }
 0xa72   :  { %1514 = vmatpush1.bf16.msra.mxu0 %v3010_v57  ;;  %1555 = vmatpush1.bf16.msra.mxu1 %v3013_v58 }
 0xa73   :  { %1515 = vmatprep.subr.bf16.mxu0 %v3016_v59  ;;  %1556 = vmatprep.subr.bf16.mxu1 %v3019_v60 }
 0xa74   :  { %1545 = vmatprep.mubr.bf16.mxu0 %v2638_v0  ;;  %1586 = vmatprep.mubr.bf16.mxu1 %v2638_v0 }
 0xa76   :  { %1516 = vmatpush1.bf16.msra.mxu0 %v3024_v61  ;;  %1557 = vmatpush1.bf16.msra.mxu1 %v3027_v62 }
 0xa77   :  { %1517 = vmatprep.subr.bf16.mxu0 %v3030_v33  ;;  %1558 = vmatprep.subr.bf16.mxu1 %v3033_v1 }
 0xa7a   :  { %1518 = vmatpush1.bf16.msra.mxu0 %v3036_v34  ;;  %1559 = vmatpush1.bf16.msra.mxu1 %v3039_v35 }
 0xa7b   :  { %1519 = vmatprep.subr.bf16.mxu0 %v3042_v36  ;;  %1560 = vmatprep.subr.bf16.mxu1 %v3045_v38 }
 0xa7e   :  { %1520 = vmatpush1.bf16.msra.mxu0 %v3048_v39  ;;  %1561 = vmatpush1.bf16.msra.mxu1 %v3051_v40 }
 0xa7f   :  { %1521 = vmatprep.subr.bf16.mxu0 %v3054_v41  ;;  %1562 = vmatprep.subr.bf16.mxu1 %v3057_v42 }
 0xa82   :  { %1522 = vmatpush1.bf16.msra.mxu0 %v3060_v43  ;;  %1563 = vmatpush1.bf16.msra.mxu1 %v3063_v44 }
 0xa83   :  { %1523 = vmatprep.subr.bf16.mxu0 %v3066_v45  ;;  %1564 = vmatprep.subr.bf16.mxu1 %v3069_v46 }
 0xa86   :  { %1524 = vmatpush1.bf16.msra.mxu0 %v3072_v47  ;;  %1565 = vmatpush1.bf16.msra.mxu1 %v3075_v48 }
 0xa87   :  { %1525 = vmatprep.subr.bf16.mxu0 %v3078_v49  ;;  %1566 = vmatprep.subr.bf16.mxu1 %v3081_v63 }
 0xa8a   :  { %1526 = vmatpush1.bf16.msra.mxu0 %v3084_v50  ;;  %1567 = vmatpush1.bf16.msra.mxu1 %v3087_v51 }
 0xa8b   :  { %1527 = vmatprep.subr.bf16.mxu0 %v3090_v52  ;;  %1568 = vmatprep.subr.bf16.mxu1 %v3093_v3 }
 0xa8e   :  { %1528 = vmatpush1.bf16.msra.mxu0 %v3096_v4  ;;  %1569 = vmatpush1.bf16.msra.mxu1 %v3099_v5 }
 0xa8f   :  { %1629 = vmatprep.subr.bf16.mxu0 %v3002_v2  ;;  %1670 = vmatprep.subr.bf16.mxu1 %v3103_v7 }
 0xb44   :  { %v1431_v25 = vpop.f32.mrb[40].mxu0  ;;  %v1472_v26 = vpop.f32.mrb[40].mxu1 }
 0xb45   :  { %v1479_v27 = vadd.f32 %v1431_v25, %v1392_v8  ;;  %v1433_v28 = vpop.f32.mrb[41].mxu0  ;;  %v1474_v29 = vpop.f32.mrb[41].mxu1  ;;  %v1481_v10 = vadd.f32 %v1472_v26, %v1394_v9 }
 0xb46   :  { %v1480_v30 = vadd.f32 %v1433_v28, %v1393_v24  ;;  %v1435_v31 = vpop.f32.mrb[42].mxu0  ;;  %v1476_v32 = vpop.f32.mrb[42].mxu1  ;;  %v1482_v12 = vadd.f32 %v1474_v29, %v1395_v11  ;;  %v1509_v28 = vld [vmem:[#allocation2 + $0x168] sm:$0xff] }
 0xb47   :  { %v2166_v53 = vmul.f32 -1.442695, %v1479_v27  ;;  %v1436_v54 = vpop.f32.mrb[43].mxu0  ;;  %v1477_v55 = vpop.f32.mrb[43].mxu1  ;;  %v2168_v13 = vmul.f32 -1.442695, %v1481_v10 }
 0xb48   :  { %v2167_v56 = vmul.f32 -1.442695, %v1480_v30 }
 0xb49   :  { %2400 = vpow2.f32 %v2166_v53 }
 0xb4a   :  { %2402 = vpow2.f32 %v2167_v56 }
 0xb4b   :  { %2404 = vtanh.f32 %v1482_v12 }
 0xb4c   :  { %2406 = vpow2.f32 %v2168_v13  ;;  %v1510_v13 = vld [vmem:[#allocation2 + $0x170] sm:$0xff] }
 0xb53   :  { %v2401_v14 = vpop.eup %2400 }
 0xb54   :  { %v1492_v15 = vadd.f32 1.0, %v2401_v14  ;;  %v2403_v16 = vpop.eup %2402  ;;  %v1511_v14 = vld [vmem:[#allocation2 + $0x178] sm:$0xff] }
 0xb55   :  { %v1493_v17 = vadd.f32 1.0, %v2403_v16  ;;  %v2405_v18 = vpop.eup %2404 }
 0xb56   :  { %2408 = vrcp.f32 %v1492_v15  ;;  %v2407_v19 = vpop.eup %2406 }
 0xb57   :  { %2410 = vrcp.f32 %v1493_v17  ;;  %v1494_v22 = vadd.f32 1.0, %v2407_v19 }
 0xb59   :  { %2412 = vrcp.f32 %v1494_v22 }
 0xb60   :  { %v2409_v20 = vpop.eup %2408 }
 0xb61   :  { %v1503_v6 = vmul.f32 %v2409_v20, %v2405_v18  ;;  %v2411_v21 = vpop.eup %2410 }
 0xb62   :  { %v1502_v23 = vmul.f32 %v2411_v21, %v3221_v37  ;;  %v1508_v37 = vld [vmem:[#allocation2 + $0x160] sm:$0xff] }
 0xb63   :  { %v2413_v24 = vpop.eup %2412 }
 0xb64   :  { %v3259_v8 = vadd.f32 %v1503_v6, %v1502_v23 }
 0xb66   :  { %2414 = vtanh.f32 %v3259_v8 }
 0xb70   :  { %v2415_v25 = vpop.eup %2414 }
 0xb71   :  { %v1506_v26 = vmul.f32 %v2415_v25, %v2413_v24 }
 0xb73   :  { %v1512_v27 = vpack.c.bf16 %v1506_v26, %v1506_v26 }
 0xb75   :  { %1546 = vmatmul.mubr.bf16.vlgmr.msra.gmra.mrb[44].mxu0 %v1512_v27  ;;  %1587 = vmatmul.mubr.bf16.vlgmr.msra.gmra.mrb[44].mxu1 %v1512_v27 }
 0xb76   :  { %1630 = vmatpush1.bf16.msra.mxu0 %v3010_v57  ;;  %1671 = vmatpush1.bf16.msra.mxu1 %v3013_v58 }
 0xb77   :  { %1631 = vmatprep.subr.bf16.mxu0 %v3016_v59  ;;  %1672 = vmatprep.subr.bf16.mxu1 %v3019_v60 }
 0xb78   :  { %1661 = vmatprep.mubr.bf16.mxu0 %v2638_v0  ;;  %1702 = vmatprep.mubr.bf16.mxu1 %v2638_v0 }
 0xb7a   :  { %1632 = vmatpush1.bf16.msra.mxu0 %v3024_v61  ;;  %1673 = vmatpush1.bf16.msra.mxu1 %v3027_v62 }
 0xb7b   :  { %1633 = vmatprep.subr.bf16.mxu0 %v3030_v33  ;;  %1674 = vmatprep.subr.bf16.mxu1 %v3033_v1 }
 0xb7e   :  { %1634 = vmatpush1.bf16.msra.mxu0 %v3036_v34  ;;  %1675 = vmatpush1.bf16.msra.mxu1 %v3039_v35 }
 0xb7f   :  { %1635 = vmatprep.subr.bf16.mxu0 %v3042_v36  ;;  %1676 = vmatprep.subr.bf16.mxu1 %v3045_v38 }
 0xb82   :  { %1636 = vmatpush1.bf16.msra.mxu0 %v3048_v39  ;;  %1677 = vmatpush1.bf16.msra.mxu1 %v3051_v40 }
 0xb83   :  { %1637 = vmatprep.subr.bf16.mxu0 %v3054_v41  ;;  %1678 = vmatprep.subr.bf16.mxu1 %v3057_v42 }
 0xb86   :  { %1638 = vmatpush1.bf16.msra.mxu0 %v3060_v43  ;;  %1679 = vmatpush1.bf16.msra.mxu1 %v3063_v44 }
 0xb87   :  { %1639 = vmatprep.subr.bf16.mxu0 %v3066_v45  ;;  %1680 = vmatprep.subr.bf16.mxu1 %v3069_v46 }
 0xb8a   :  { %1640 = vmatpush1.bf16.msra.mxu0 %v3072_v47  ;;  %1681 = vmatpush1.bf16.msra.mxu1 %v3075_v48 }
 0xb8b   :  { %1641 = vmatprep.subr.bf16.mxu0 %v3078_v49  ;;  %1682 = vmatprep.subr.bf16.mxu1 %v3081_v63 }
 0xb8e   :  { %1642 = vmatpush1.bf16.msra.mxu0 %v3084_v50  ;;  %1683 = vmatpush1.bf16.msra.mxu1 %v3087_v51 }
 0xb8f   :  { %1643 = vmatprep.subr.bf16.mxu0 %v3090_v52  ;;  %1684 = vmatprep.subr.bf16.mxu1 %v3093_v3 }
 0xb92   :  { %1644 = vmatpush1.bf16.msra.mxu0 %v3096_v4  ;;  %1685 = vmatpush1.bf16.msra.mxu1 %v3099_v5 }
 0xb93   :  { %1745 = vmatprep.subr.bf16.mxu0 %v3002_v2  ;;  %1786 = vmatprep.subr.bf16.mxu1 %v3103_v7 }
 0xc48   :  { %v1547_v29 = vpop.f32.mrb[44].mxu0  ;;  %v1588_v30 = vpop.f32.mrb[44].mxu1 }
 0xc49   :  { %v1595_v31 = vadd.f32 %v1547_v29, %v1508_v37  ;;  %v1549_v32 = vpop.f32.mrb[45].mxu0  ;;  %v1590_v53 = vpop.f32.mrb[45].mxu1  ;;  %v1597_v2 = vadd.f32 %v1588_v30, %v1510_v13  ;;  %v3360_v13 = vld [vmem:[#allocation5 + $0x44] ss:$16 sps:$4 sm:$0xff]  }
 0xc4a   :  { %v1596_v54 = vadd.f32 %v1549_v32, %v1509_v28  ;;  %v1551_v55 = vpop.f32.mrb[46].mxu0  ;;  %v1592_v56 = vpop.f32.mrb[46].mxu1  ;;  %v1598_v15 = vadd.f32 %v1590_v53, %v1511_v14  ;;  %v3366_v14 = vld [vmem:[#allocation5 + $0x40] ss:$16 sps:$4 sm:$0xff]  }
 0xc4b   :  { %v2169_v9 = vmul.f32 -1.442695, %v1595_v31  ;;  %v1552_v10 = vpop.f32.mrb[47].mxu0  ;;  %v1593_v11 = vpop.f32.mrb[47].mxu1  ;;  %v2171_v16 = vmul.f32 -1.442695, %v1597_v2 }
 0xc4c   :  { %v2170_v12 = vmul.f32 -1.442695, %v1596_v54  ;;  %v3340_v55 = vld [vmem:[#allocation5] ss:$16 sps:$4 sm:$0xff]   ;;  %v3343_v56 = vld [vmem:[#allocation5 + $0x8] ss:$16 sps:$4 sm:$0xff]  }
 0xc4d   :  { %2416 = vpow2.f32 %v2169_v9  ;;  %v3346_v9 = vld [vmem:[#allocation5 + $0x24] ss:$16 sps:$4 sm:$0xff]   ;;  %v3349_v10 = vld [vmem:[#allocation5 + $0x2c] ss:$16 sps:$4 sm:$0xff]   ;;  %v3354_v11 = vld [vmem:[#allocation5 + $0x20] ss:$16 sps:$4 sm:$0xff]  }
 0xc4e   :  { %2418 = vpow2.f32 %v2170_v12  ;;  %v3357_v12 = vld [vmem:[#allocation5 + $0x28] ss:$16 sps:$4 sm:$0xff]   ;;  %v3363_v2 = vld [vmem:[#allocation5 + $0x4c] ss:$16 sps:$4 sm:$0xff]  }
 0xc4f   :  { %2420 = vtanh.f32 %v1598_v15  ;;  %v3369_v15 = vld [vmem:[#allocation5 + $0x48] ss:$16 sps:$4 sm:$0xff]  }
 0xc50   :  { %2422 = vpow2.f32 %v2171_v16  ;;  %v3372_v16 = vld [vmem:[#allocation5 + $0x64] ss:$16 sps:$4 sm:$0xff]  }
 0xc57   :  { %v2417_v17 = vpop.eup %2416 }
 0xc58   :  { %v1608_v18 = vadd.f32 1.0, %v2417_v17  ;;  %v2419_v19 = vpop.eup %2418  ;;  %v3375_v17 = vld [vmem:[#allocation5 + $0x6c] ss:$16 sps:$4 sm:$0xff]  }
 0xc59   :  { %v1609_v20 = vadd.f32 1.0, %v2419_v19  ;;  %v2421_v6 = vpop.eup %2420  ;;  %v3381_v19 = vld [vmem:[#allocation5 + $0x68] ss:$16 sps:$4 sm:$0xff]  }
 0xc5a   :  { %2424 = vrcp.f32 %v1608_v18  ;;  %v2423_v21 = vpop.eup %2422  ;;  %v3378_v18 = vld [vmem:[#allocation5 + $0x60] ss:$16 sps:$4 sm:$0xff]  }
 0xc5b   :  { %2426 = vrcp.f32 %v1609_v20  ;;  %v1610_v25 = vadd.f32 1.0, %v2423_v21  ;;  %v3384_v20 = vld [vmem:[#allocation5 + $0x84] ss:$16 sps:$4 sm:$0xff]   ;;  %v3390_v21 = vld [vmem:[#allocation5 + $0x80] ss:$16 sps:$4 sm:$0xff]  }
 0xc5d   :  { %2428 = vrcp.f32 %v1610_v25  ;;  %v3402_v25 = vld [vmem:[#allocation5 + $0xa0] ss:$16 sps:$4 sm:$0xff]  }
 0xc64   :  { %v2425_v22 = vpop.eup %2424 }
 0xc65   :  { %v1619_v23 = vmul.f32 %v2425_v22, %v2421_v6  ;;  %v2427_v24 = vpop.eup %2426  ;;  %v3387_v6 = vld [vmem:[#allocation5 + $0x8c] ss:$16 sps:$4 sm:$0xff]   ;;  %v3393_v22 = vld [vmem:[#allocation5 + $0x88] ss:$16 sps:$4 sm:$0xff]  }
 0xc66   :  { %v1618_v26 = vmul.f32 %v2427_v24, %v3259_v8  ;;  %v3399_v24 = vld [vmem:[#allocation5 + $0xac] ss:$16 sps:$4 sm:$0xff]  }
 0xc67   :  { %v2429_v37 = vpop.eup %2428 }
 0xc68   :  { %v3297_v27 = vadd.f32 %v1619_v23, %v1618_v26  ;;  %v3396_v23 = vld [vmem:[#allocation5 + $0xa4] ss:$16 sps:$4 sm:$0xff]   ;;  %v3405_v26 = vld [vmem:[#allocation5 + $0xa8] ss:$16 sps:$4 sm:$0xff]  }
 0xc6a   :  { %2430 = vtanh.f32 %v3297_v27 }
 0xc74   :  { %v2431_v28 = vpop.eup %2430 }
 0xc75   :  { %v1622_v29 = vmul.f32 %v2431_v28, %v2429_v37  ;;  %v3411_v37 = vld [vmem:[#allocation5 + $0xcc] ss:$16 sps:$4 sm:$0xff]   ;;  %v3414_v28 = vld [vmem:[#allocation5 + $0xc0] ss:$16 sps:$4 sm:$0xff]  }
 0xc77   :  { %v1628_v30 = vpack.c.bf16 %v1622_v29, %v1622_v29  ;;  %v3417_v29 = vld [vmem:[#allocation5 + $0xc8] ss:$16 sps:$4 sm:$0xff]  }
 0xc79   :  { %1662 = vmatmul.mubr.bf16.vlgmr.msra.gmra.mrb[48].mxu0 %v1628_v30  ;;  %1703 = vmatmul.mubr.bf16.vlgmr.msra.gmra.mrb[48].mxu1 %v1628_v30  ;;  %v3420_v30 = vld [vmem:[#allocation5 + $0xe4] ss:$16 sps:$4 sm:$0xff]  }
 0xc7a   :  { %1746 = vmatpush1.bf16.msra.mxu0 %v3010_v57  ;;  %1787 = vmatpush1.bf16.msra.mxu1 %v3013_v58  ;;  %v3332_v57 = vld [vmem:[#allocation5 + $0x4] ss:$16 sps:$4 sm:$0xff]  }
 0xc7b   :  { %1747 = vmatprep.subr.bf16.mxu0 %v3016_v59  ;;  %1788 = vmatprep.subr.bf16.mxu1 %v3019_v60  ;;  %v1624_v58 = vld [vmem:[#allocation2 + $0x180] sm:$0xff]  ;;  %v1625_v59 = vld [vmem:[#allocation2 + $0x188] sm:$0xff] }
 0xc7c   :  { %1777 = vmatprep.mubr.bf16.mxu0 %v2638_v0  ;;  %1818 = vmatprep.mubr.bf16.mxu1 %v2638_v0 }
 0xc7e   :  { %1748 = vmatpush1.bf16.msra.mxu0 %v3024_v61  ;;  %1789 = vmatpush1.bf16.msra.mxu1 %v3027_v62 }
 0xc7f   :  { %1749 = vmatprep.subr.bf16.mxu0 %v3030_v33  ;;  %1790 = vmatprep.subr.bf16.mxu1 %v3033_v1 }
 0xc82   :  { %1750 = vmatpush1.bf16.msra.mxu0 %v3036_v34  ;;  %1791 = vmatpush1.bf16.msra.mxu1 %v3039_v35 }
 0xc83   :  { %1751 = vmatprep.subr.bf16.mxu0 %v3042_v36  ;;  %1792 = vmatprep.subr.bf16.mxu1 %v3045_v38 }
 0xc86   :  { %1752 = vmatpush1.bf16.msra.mxu0 %v3048_v39  ;;  %1793 = vmatpush1.bf16.msra.mxu1 %v3051_v40 }
 0xc87   :  { %1753 = vmatprep.subr.bf16.mxu0 %v3054_v41  ;;  %1794 = vmatprep.subr.bf16.mxu1 %v3057_v42  ;;  %v1626_v42 = vld [vmem:[#allocation2 + $0x190] sm:$0xff] }
 0xc8a   :  { %1754 = vmatpush1.bf16.msra.mxu0 %v3060_v43  ;;  %1795 = vmatpush1.bf16.msra.mxu1 %v3063_v44  ;;  %v1627_v44 = vld [vmem:[#allocation2 + $0x198] sm:$0xff] }
 0xc8b   :  { %1755 = vmatprep.subr.bf16.mxu0 %v3066_v45  ;;  %1796 = vmatprep.subr.bf16.mxu1 %v3069_v46 }
 0xc8e   :  { %1756 = vmatpush1.bf16.msra.mxu0 %v3072_v47  ;;  %1797 = vmatpush1.bf16.msra.mxu1 %v3075_v48 }
 0xc8f   :  { %1757 = vmatprep.subr.bf16.mxu0 %v3078_v49  ;;  %1798 = vmatprep.subr.bf16.mxu1 %v3081_v63 }
 0xc92   :  { %1758 = vmatpush1.bf16.msra.mxu0 %v3084_v50  ;;  %1799 = vmatpush1.bf16.msra.mxu1 %v3087_v51 }
 0xc93   :  { %1759 = vmatprep.subr.bf16.mxu0 %v3090_v52  ;;  %1800 = vmatprep.subr.bf16.mxu1 %v3093_v3 }
 0xc96   :  { %1760 = vmatpush1.bf16.msra.mxu0 %v3096_v4  ;;  %1801 = vmatpush1.bf16.msra.mxu1 %v3099_v5 }
 0xc97   :  { %1861 = vmatprep.subr.bf16.mxu0 %v3332_v57  ;;  %1902 = vmatprep.subr.bf16.mxu1 %v3103_v7 }
 0xd4c   :  { %v1663_v60 = vpop.f32.mrb[48].mxu0  ;;  %v1704_v61 = vpop.f32.mrb[48].mxu1 }
 0xd4d   :  { %v1711_v62 = vadd.f32 %v1663_v60, %v1624_v58  ;;  %v1665_v33 = vpop.f32.mrb[49].mxu0  ;;  %v1706_v1 = vpop.f32.mrb[49].mxu1  ;;  %v1713_v43 = vadd.f32 %v1704_v61, %v1626_v42  ;;  %v3423_v58 = vld [vmem:[#allocation5 + $0xec] ss:$16 sps:$4 sm:$0xff]   ;;  %v3429_v60 = vld [vmem:[#allocation5 + $0xe8] ss:$16 sps:$4 sm:$0xff]  }
 0xd4e   :  { %v1712_v34 = vadd.f32 %v1665_v33, %v1625_v59  ;;  %v1667_v35 = vpop.f32.mrb[50].mxu0  ;;  %v1708_v36 = vpop.f32.mrb[50].mxu1  ;;  %v1714_v45 = vadd.f32 %v1706_v1, %v1627_v44  ;;  %v3426_v59 = vld [vmem:[#allocation5 + $0xe0] ss:$16 sps:$4 sm:$0xff]   ;;  %v2559_v61 = vld [vmem:[#allocation5 + $0xc] ss:$16 sps:$4 sm:$0xff]  }
 0xd4f   :  { %v2172_v38 = vmul.f32 -1.442695, %v1711_v62  ;;  %v1668_v39 = vpop.f32.mrb[51].mxu0  ;;  %v1709_v40 = vpop.f32.mrb[51].mxu1  ;;  %v2174_v46 = vmul.f32 -1.442695, %v1713_v43 }
 0xd50   :  { %v2173_v41 = vmul.f32 -1.442695, %v1712_v34  ;;  %v1740_v62 = vld [vmem:[#allocation2 + $0x1a0] sm:$0xff]  ;;  %v1741_v33 = vld [vmem:[#allocation2 + $0x1a8] sm:$0xff] }
 0xd51   :  { %2432 = vpow2.f32 %v2172_v38 }
 0xd52   :  { %2434 = vpow2.f32 %v2173_v41 }
 0xd53   :  { %2436 = vtanh.f32 %v1714_v45 }
 0xd54   :  { %2438 = vpow2.f32 %v2174_v46  ;;  %v1742_v46 = vld [vmem:[#allocation2 + $0x1b0] sm:$0xff] }
 0xd5b   :  { %v2433_v47 = vpop.eup %2432 }
 0xd5c   :  { %v1724_v48 = vadd.f32 1.0, %v2433_v47  ;;  %v2435_v49 = vpop.eup %2434  ;;  %v1743_v47 = vld [vmem:[#allocation2 + $0x1b8] sm:$0xff] }
 0xd5d   :  { %v1725_v63 = vadd.f32 1.0, %v2435_v49  ;;  %v2437_v50 = vpop.eup %2436 }
 0xd5e   :  { %2440 = vrcp.f32 %v1724_v48  ;;  %v2439_v51 = vpop.eup %2438 }
 0xd5f   :  { %2442 = vrcp.f32 %v1725_v63  ;;  %v1726_v5 = vadd.f32 1.0, %v2439_v51 }
 0xd61   :  { %2444 = vrcp.f32 %v1726_v5 }
 0xd68   :  { %v2441_v52 = vpop.eup %2440 }
 0xd69   :  { %v1735_v3 = vmul.f32 %v2441_v52, %v2437_v50  ;;  %v2443_v4 = vpop.eup %2442 }
 0xd6a   :  { %v1734_v7 = vmul.f32 %v2443_v4, %v3297_v27  ;;  %v3408_v27 = vld [vmem:[#allocation5 + $0xc4] ss:$16 sps:$4 sm:$0xff]  }
 0xd6b   :  { %v2445_v31 = vpop.eup %2444 }
 0xd6c   :  { %v3337_v8 = vadd.f32 %v1735_v3, %v1734_v7 }
 0xd6e   :  { %2446 = vtanh.f32 %v3337_v8 }
 0xd78   :  { %v2447_v32 = vpop.eup %2446 }
 0xd79   :  { %v1738_v53 = vmul.f32 %v2447_v32, %v2445_v31 }
 0xd7b   :  { %v1744_v54 = vpack.c.bf16 %v1738_v53, %v1738_v53 }
 0xd7d   :  { %1778 = vmatmul.mubr.bf16.vlgmr.msra.gmra.mrb[52].mxu0 %v1744_v54  ;;  %1819 = vmatmul.mubr.bf16.vlgmr.msra.gmra.mrb[52].mxu1 %v1744_v54 }
 0xd7e   :  { %1862 = vmatpush1.bf16.msra.mxu0 %v3340_v55  ;;  %1903 = vmatpush1.bf16.msra.mxu1 %v3343_v56 }
 0xd7f   :  { %1863 = vmatprep.subr.bf16.mxu0 %v3346_v9  ;;  %1904 = vmatprep.subr.bf16.mxu1 %v3349_v10 }
 0xd80   :  { %1893 = vmatprep.mubr.bf16.mxu0 %v2638_v0  ;;  %1934 = vmatprep.mubr.bf16.mxu1 %v2638_v0 }
 0xd82   :  { %1864 = vmatpush1.bf16.msra.mxu0 %v3354_v11  ;;  %1905 = vmatpush1.bf16.msra.mxu1 %v3357_v12 }
 0xd83   :  { %1865 = vmatprep.subr.bf16.mxu0 %v3360_v13  ;;  %1906 = vmatprep.subr.bf16.mxu1 %v3363_v2 }
 0xd86   :  { %1866 = vmatpush1.bf16.msra.mxu0 %v3366_v14  ;;  %1907 = vmatpush1.bf16.msra.mxu1 %v3369_v15 }
 0xd87   :  { %1867 = vmatprep.subr.bf16.mxu0 %v3372_v16  ;;  %1908 = vmatprep.subr.bf16.mxu1 %v3375_v17 }
 0xd8a   :  { %1868 = vmatpush1.bf16.msra.mxu0 %v3378_v18  ;;  %1909 = vmatpush1.bf16.msra.mxu1 %v3381_v19 }
 0xd8b   :  { %1869 = vmatprep.subr.bf16.mxu0 %v3384_v20  ;;  %1910 = vmatprep.subr.bf16.mxu1 %v3387_v6 }
 0xd8e   :  { %1870 = vmatpush1.bf16.msra.mxu0 %v3390_v21  ;;  %1911 = vmatpush1.bf16.msra.mxu1 %v3393_v22 }
 0xd8f   :  { %1871 = vmatprep.subr.bf16.mxu0 %v3396_v23  ;;  %1912 = vmatprep.subr.bf16.mxu1 %v3399_v24 }
 0xd92   :  { %1872 = vmatpush1.bf16.msra.mxu0 %v3402_v25  ;;  %1913 = vmatpush1.bf16.msra.mxu1 %v3405_v26 }
 0xd93   :  { %1873 = vmatprep.subr.bf16.mxu0 %v3408_v27  ;;  %1914 = vmatprep.subr.bf16.mxu1 %v3411_v37 }
 0xd96   :  { %1874 = vmatpush1.bf16.msra.mxu0 %v3414_v28  ;;  %1915 = vmatpush1.bf16.msra.mxu1 %v3417_v29 }
 0xd97   :  { %1875 = vmatprep.subr.bf16.mxu0 %v3420_v30  ;;  %1916 = vmatprep.subr.bf16.mxu1 %v3423_v58 }
 0xd9a   :  { %1876 = vmatpush1.bf16.msra.mxu0 %v3426_v59  ;;  %1917 = vmatpush1.bf16.msra.mxu1 %v3429_v60 }
 0xd9b   :  { %1977 = vmatprep.subr.bf16.mxu0 %v3332_v57  ;;  %2018 = vmatprep.subr.bf16.mxu1 %v2559_v61 }
 0xe50   :  { %v1779_v1 = vpop.f32.mrb[52].mxu0  ;;  %v1820_v34 = vpop.f32.mrb[52].mxu1 }
 0xe51   :  { %v1827_v35 = vadd.f32 %v1779_v1, %v1740_v62  ;;  %v1781_v36 = vpop.f32.mrb[53].mxu0  ;;  %v1822_v38 = vpop.f32.mrb[53].mxu1  ;;  %v1829_v57 = vadd.f32 %v1820_v34, %v1742_v46 }
 0xe52   :  { %v1828_v39 = vadd.f32 %v1781_v36, %v1741_v33  ;;  %v1783_v40 = vpop.f32.mrb[54].mxu0  ;;  %v1824_v41 = vpop.f32.mrb[54].mxu1  ;;  %v1830_v48 = vadd.f32 %v1822_v38, %v1743_v47  ;;  %v1972_v38 = vld [vmem:[#allocation2 + $0x1e0] sm:$0xff] }
 0xe53   :  { %v2175_v42 = vmul.f32 -1.442695, %v1827_v35  ;;  %v1784_v43 = vpop.f32.mrb[55].mxu0  ;;  %v1825_v44 = vpop.f32.mrb[55].mxu1  ;;  %v2177_v49 = vmul.f32 -1.442695, %v1829_v57 }
 0xe54   :  { %v2176_v45 = vmul.f32 -1.442695, %v1828_v39  ;;  %v1973_v39 = vld [vmem:[#allocation2 + $0x1e8] sm:$0xff] }
 0xe55   :  { %2448 = vpow2.f32 %v2175_v42 }
 0xe56   :  { %2450 = vpow2.f32 %v2176_v45 }
 0xe57   :  { %2452 = vtanh.f32 %v1830_v48 }
 0xe58   :  { %2454 = vpow2.f32 %v2177_v49 }
 0xe5f   :  { %v2449_v63 = vpop.eup %2448 }
 0xe60   :  { %v1840_v50 = vadd.f32 1.0, %v2449_v63  ;;  %v2451_v51 = vpop.eup %2450 }
 0xe61   :  { %v1841_v52 = vadd.f32 1.0, %v2451_v51  ;;  %v2453_v3 = vpop.eup %2452 }
 0xe62   :  { %2456 = vrcp.f32 %v1840_v50  ;;  %v2455_v4 = vpop.eup %2454  ;;  %v1974_v50 = vld [vmem:[#allocation2 + $0x1f0] sm:$0xff] }
 0xe63   :  { %2458 = vrcp.f32 %v1841_v52  ;;  %v1842_v32 = vadd.f32 1.0, %v2455_v4  ;;  %v1975_v52 = vld [vmem:[#allocation2 + $0x1f8] sm:$0xff] }
 0xe65   :  { %2460 = vrcp.f32 %v1842_v32 }
 0xe6c   :  { %v2457_v5 = vpop.eup %2456 }
 0xe6d   :  { %v1851_v7 = vmul.f32 %v2457_v5, %v2453_v3  ;;  %v2459_v31 = vpop.eup %2458 }
 0xe6e   :  { %v1850_v53 = vmul.f32 %v2459_v31, %v3337_v8  ;;  %v1857_v8 = vld [vmem:[#allocation2 + $0x1c8] sm:$0xff] }
 0xe6f   :  { %v2461_v61 = vpop.eup %2460 }
 0xe70   :  { %v3434_v54 = vadd.f32 %v1851_v7, %v1850_v53 }
 0xe72   :  { %2462 = vtanh.f32 %v3434_v54 }
 0xe7c   :  { %v2463_v62 = vpop.eup %2462 }
 0xe7d   :  { %v1854_v33 = vmul.f32 %v2463_v62, %v2461_v61 }
 0xe7f   :  { %v1860_v1 = vpack.c.bf16 %v1854_v33, %v1854_v33 }
 0xe81   :  { %1894 = vmatmul.mubr.bf16.vlgmr.msra.gmra.mrb[56].mxu0 %v1860_v1  ;;  %1935 = vmatmul.mubr.bf16.vlgmr.msra.gmra.mrb[56].mxu1 %v1860_v1 }
 0xe82   :  { %1978 = vmatpush1.bf16.msra.mxu0 %v3340_v55  ;;  %2019 = vmatpush1.bf16.msra.mxu1 %v3343_v56 }
 0xe83   :  { %1979 = vmatprep.subr.bf16.mxu0 %v3346_v9  ;;  %2020 = vmatprep.subr.bf16.mxu1 %v3349_v10 }
 0xe84   :  { %2009 = vmatprep.mubr.bf16.mxu0 %v2638_v0  ;;  %2050 = vmatprep.mubr.bf16.mxu1 %v2638_v0  ;;  %v1856_v0 = vld [vmem:[#allocation2 + $0x1c0] sm:$0xff] }
 0xe86   :  { %1980 = vmatpush1.bf16.msra.mxu0 %v3354_v11  ;;  %2021 = vmatpush1.bf16.msra.mxu1 %v3357_v12 }
 0xe87   :  { %1981 = vmatprep.subr.bf16.mxu0 %v3360_v13  ;;  %2022 = vmatprep.subr.bf16.mxu1 %v3363_v2 }
 0xe8a   :  { %1982 = vmatpush1.bf16.msra.mxu0 %v3366_v14  ;;  %2023 = vmatpush1.bf16.msra.mxu1 %v3369_v15 }
 0xe8b   :  { %1983 = vmatprep.subr.bf16.mxu0 %v3372_v16  ;;  %2024 = vmatprep.subr.bf16.mxu1 %v3375_v17 }
 0xe8e   :  { %1984 = vmatpush1.bf16.msra.mxu0 %v3378_v18  ;;  %2025 = vmatpush1.bf16.msra.mxu1 %v3381_v19  ;;  %v1858_v18 = vld [vmem:[#allocation2 + $0x1d0] sm:$0xff] }
 0xe8f   :  { %1985 = vmatprep.subr.bf16.mxu0 %v3384_v20  ;;  %2026 = vmatprep.subr.bf16.mxu1 %v3387_v6  ;;  %v1859_v20 = vld [vmem:[#allocation2 + $0x1d8] sm:$0xff] }
 0xe92   :  { %1986 = vmatpush1.bf16.msra.mxu0 %v3390_v21  ;;  %2027 = vmatpush1.bf16.msra.mxu1 %v3393_v22 }
 0xe93   :  { %1987 = vmatprep.subr.bf16.mxu0 %v3396_v23  ;;  %2028 = vmatprep.subr.bf16.mxu1 %v3399_v24 }
 0xe96   :  { %1988 = vmatpush1.bf16.msra.mxu0 %v3402_v25  ;;  %2029 = vmatpush1.bf16.msra.mxu1 %v3405_v26 }
 0xe97   :  { %1989 = vmatprep.subr.bf16.mxu0 %v3408_v27  ;;  %2030 = vmatprep.subr.bf16.mxu1 %v3411_v37 }
 0xe9a   :  { %1990 = vmatpush1.bf16.msra.mxu0 %v3414_v28  ;;  %2031 = vmatpush1.bf16.msra.mxu1 %v3417_v29 }
 0xe9b   :  { %1991 = vmatprep.subr.bf16.mxu0 %v3420_v30  ;;  %2032 = vmatprep.subr.bf16.mxu1 %v3423_v58 }
 0xe9e   :  { %1992 = vmatpush1.bf16.msra.mxu0 %v3426_v59  ;;  %2033 = vmatpush1.bf16.msra.mxu1 %v3429_v60 }
 0xf54   :  { %v1895_v55 = vpop.f32.mrb[56].mxu0  ;;  %v1936_v56 = vpop.f32.mrb[56].mxu1 }
 0xf55   :  { %v1943_v9 = vadd.f32 %v1895_v55, %v1856_v0  ;;  %v1897_v10 = vpop.f32.mrb[57].mxu0  ;;  %v1938_v11 = vpop.f32.mrb[57].mxu1  ;;  %v1945_v19 = vadd.f32 %v1936_v56, %v1858_v18 }
 0xf56   :  { %v1944_v12 = vadd.f32 %v1897_v10, %v1857_v8  ;;  %v1899_v13 = vpop.f32.mrb[58].mxu0  ;;  %v1940_v2 = vpop.f32.mrb[58].mxu1  ;;  %v1946_v6 = vadd.f32 %v1938_v11, %v1859_v20 }
 0xf57   :  { %v2178_v14 = vmul.f32 -1.442695, %v1943_v9  ;;  %v1900_v15 = vpop.f32.mrb[59].mxu0  ;;  %v1941_v16 = vpop.f32.mrb[59].mxu1  ;;  %v2180_v21 = vmul.f32 -1.442695, %v1945_v19 }
 0xf58   :  { %v2179_v17 = vmul.f32 -1.442695, %v1944_v12 }
 0xf59   :  { %2464 = vpow2.f32 %v2178_v14 }
 0xf5a   :  { %2466 = vpow2.f32 %v2179_v17 }
 0xf5b   :  { %2468 = vtanh.f32 %v1946_v6 }
 0xf5c   :  { %2470 = vpow2.f32 %v2180_v21 }
 0xf63   :  { %v2465_v22 = vpop.eup %2464 }
 0xf64   :  { %v1956_v23 = vadd.f32 1.0, %v2465_v22  ;;  %v2467_v24 = vpop.eup %2466 }
 0xf65   :  { %v1957_v25 = vadd.f32 1.0, %v2467_v24  ;;  %v2469_v26 = vpop.eup %2468 }
 0xf66   :  { %2472 = vrcp.f32 %v1956_v23  ;;  %v2471_v27 = vpop.eup %2470 }
 0xf67   :  { %2474 = vrcp.f32 %v1957_v25  ;;  %v1958_v30 = vadd.f32 1.0, %v2471_v27 }
 0xf69   :  { %2476 = vrcp.f32 %v1958_v30 }
 0xf70   :  { %v2473_v37 = vpop.eup %2472 }
 0xf71   :  { %v1967_v28 = vmul.f32 %v2473_v37, %v2469_v26  ;;  %v2475_v29 = vpop.eup %2474 }
 0xf72   :  { %v1966_v58 = vmul.f32 %v2475_v29, %v3434_v54 }
 0xf73   :  { %v2477_v60 = vpop.eup %2476 }
 0xf74   :  { %v1968_v59 = vadd.f32 %v1967_v28, %v1966_v58 }
 0xf76   :  { %2478 = vtanh.f32 %v1968_v59 }
 0xf80   :  { %v2479_v34 = vpop.eup %2478 }
 0xf81   :  { %v1970_v35 = vmul.f32 %v2479_v34, %v2477_v60 }
 0xf83   :  { %v1976_v36 = vpack.c.bf16 %v1970_v35, %v1970_v35 }
 0xf85   :  { %2010 = vmatmul.mubr.bf16.vlgmr.msra.gmra.mrb[60].mxu0 %v1976_v36  ;;  %2051 = vmatmul.mubr.bf16.vlgmr.msra.gmra.mrb[60].mxu1 %v1976_v36 }
0x1058   :  { %v2011_v40 = vpop.f32.mrb[60].mxu0  ;;  %v2052_v41 = vpop.f32.mrb[60].mxu1 }
0x1059   :  { %v2059_v42 = vadd.f32 %v2011_v40, %v1972_v38  ;;  %v2013_v43 = vpop.f32.mrb[61].mxu0  ;;  %v2054_v44 = vpop.f32.mrb[61].mxu1  ;;  %v2061_v51 = vadd.f32 %v2052_v41, %v1974_v50 }
0x105a   :  { %v2060_v45 = vadd.f32 %v2013_v43, %v1973_v39  ;;  %v2015_v46 = vpop.f32.mrb[62].mxu0  ;;  %v2056_v57 = vpop.f32.mrb[62].mxu1  ;;  %v2062_v3 = vadd.f32 %v2054_v44, %v1975_v52 }
0x105b   :  { %v2181_v47 = vmul.f32 -1.442695, %v2059_v42  ;;  %v2016_v48 = vpop.f32.mrb[63].mxu0  ;;  %v2057_v49 = vpop.f32.mrb[63].mxu1  ;;  %v2183_v4 = vmul.f32 -1.442695, %v2061_v51 }
0x105c   :  { %v2182_v63 = vmul.f32 -1.442695, %v2060_v45 }
0x105d   :  { %2480 = vpow2.f32 %v2181_v47 }
0x105e   :  { %2482 = vpow2.f32 %v2182_v63 }
0x105f   :  { %2484 = vtanh.f32 %v2062_v3 }
0x1060   :  { %2486 = vpow2.f32 %v2183_v4 }
0x1067   :  { %v2481_v5 = vpop.eup %2480 }
0x1068   :  { %v2072_v7 = vadd.f32 1.0, %v2481_v5  ;;  %v2483_v31 = vpop.eup %2482 }
0x1069   :  { %v2073_v32 = vadd.f32 1.0, %v2483_v31  ;;  %v2485_v53 = vpop.eup %2484 }
0x106a   :  { %2488 = vrcp.f32 %v2072_v7  ;;  %v2487_v54 = vpop.eup %2486 }
0x106b   :  { %2490 = vrcp.f32 %v2073_v32  ;;  %v2074_v1 = vadd.f32 1.0, %v2487_v54 }
0x106d   :  { %2492 = vrcp.f32 %v2074_v1 }
0x1074   :  { %v2489_v61 = vpop.eup %2488 }
0x1075   :  { %v2083_v62 = vmul.f32 %v2489_v61, %v2485_v53  ;;  %v2491_v33 = vpop.eup %2490 }
0x1076   :  { %v2082_v0 = vmul.f32 %v2491_v33, %v1968_v59 }
0x1077   :  { %v2493_v55 = vpop.eup %2492 }
0x1078   :  { %v2084_v8 = vadd.f32 %v2083_v62, %v2082_v0 }
0x107a   :  { %2494 = vtanh.f32 %v2084_v8 }
0x1084   :  { %v2495_v56 = vpop.eup %2494 }
0x1085   :  { %v2086_v9 = vmul.f32 %v2495_v56, %v2493_v55 }
0x1087   :  { %2087 = vst [vmem:[#allocation7] sm:$0xff] %v2086_v9 }
0x1088   :  { %2615 = shalt.err (!%p2612_p6)
}
0x1089   :  { %s2616_s12 = scalar_lea.hbm %s3484_s2, 128 }
0x108a   :  { %p2617_p7 = scmp.ne.s32.totalorder %s3484_s2, %s2616_s12  ;;  %p2620_p8 = scmp.lt.u32.totalorder %s2616_s12, %s3484_s2 }
0x108c   :  { %p2622_p9 = pnand %p2620_p8, %p2617_p7 }
0x108e   :  { %2625 = shalt.err (!%p2622_p9)
}
0x108f   :  { %2097 = dma.vmem_to_hbm [thread:$0]  %s2095_s8, 128, %s3484_s2, [#allocation4]  }
0x1090   :  { %2630 = dma.done.wait [#allocation4], 128  }
0x1091   :  { %2631 = vsyncadd [#allocation4], 4294967168 }
0x1092   :  { %2101 = vsyncpa [#allocation3], 1 }
0x1093   :  { %2102 = vsyncpa [#allocation6], 1 }
0x1094   :  { %2103 = vsyncpa [#allocation4], 1 }

</bundles_post_ra>
